<compile_context>
chip_gen: v7x
topology: tpu7x:2x2x1
jax: 0.10.0
libtpu: 0.0.40
codegen_flags: <defaults>
</compile_context>

<pallas_src>
import jax
import jax.numpy as jnp
from jax.experimental import pallas as pl
from jax.experimental.pallas import tpu as pltpu

_BF16 = jnp.bfloat16
_LANE_CAP = 32768                      # max lane-tile width (big tiles for v5e/v6e)
_VMEM_LIMIT = 48 * 1024 * 1024         # explicit budget; safe on v7x (64 MiB physical)


# ----------------------------------------------------------------------------
# Pallas kernels: lane-dense (Cout, K) @ (K, tm) pointwise convs with fusion
# ----------------------------------------------------------------------------
def _mm_relu_kernel(x_ref, w_ref, o_ref):
    # o = relu(W @ x);  x:(K, tm)  W:(N, K)  o:(N, tm)
    y = jnp.dot(w_ref[...].astype(_BF16), x_ref[...].astype(_BF16),
                preferred_element_type=jnp.float32)
    o_ref[...] = jnp.maximum(y, 0.0).astype(o_ref.dtype)


def _fu_conv_kernel(re_ref, im_ref, wr_ref, wi_ref, o_ref):
    # FourierUnit 1x1 conv + relu, weight split in K over (real, imag) inputs:
    # o = relu(W_r @ re + W_i @ im)
    y = jnp.dot(wr_ref[...].astype(_BF16), re_ref[...].astype(_BF16),
                preferred_element_type=jnp.float32)
    y = y + jnp.dot(wi_ref[...].astype(_BF16), im_ref[...].astype(_BF16),
                    preferred_element_type=jnp.float32)
    o_ref[...] = jnp.maximum(y, 0.0).astype(o_ref.dtype)


def _ffc_tail_kernel(xl_ref, xg_ref, x1_ref, fu_ref, lfu_ref,
                     wll_ref, wgl_ref, wlg_ref, wc2_ref, ol_ref, og_ref):
    # Fuses:  spec_x = conv2(x1 + fu + lfu_2x2)   (lfu 2x2 tile realized via
    #         out_l  = convl2l(x_l) + convg2l(x_g) the modular lane index_map)
    #         out_g  = convl2g(x_l) + spec_x
    xl = xl_ref[...].astype(_BF16)
    xg = xg_ref[...].astype(_BF16)
    s = x1_ref[...].astype(jnp.float32) + fu_ref[...] + lfu_ref[...]  # f32 VPU adds
    out_l = jnp.dot(wll_ref[...].astype(_BF16), xl,
                    preferred_element_type=jnp.float32)
    out_l = out_l + jnp.dot(wgl_ref[...].astype(_BF16), xg,
                            preferred_element_type=jnp.float32)
    out_g = jnp.dot(wlg_ref[...].astype(_BF16), xl,
                    preferred_element_type=jnp.float32)
    out_g = out_g + jnp.dot(wc2_ref[...].astype(_BF16), s.astype(_BF16),
                            preferred_element_type=jnp.float32)
    ol_ref[...] = out_l.astype(ol_ref.dtype)
    og_ref[...] = out_g.astype(og_ref.dtype)


# ----------------------------------------------------------------------------
# pallas_call helpers (batch x lane-tile grid)
# ----------------------------------------------------------------------------
def _compiler_params():
    return pltpu.CompilerParams(
        dimension_semantics=("parallel", "parallel"),
        vmem_limit_bytes=_VMEM_LIMIT)


def _pick_tile(m, cap=_LANE_CAP):
    """(tile, n_blocks) along a lane axis of length m: whole extent when small,
    else the largest 128-aligned divisor <= cap, else a ragged cdiv split."""
    if m <= cap:
        return m, 1
    t = (cap // 128) * 128
    while t >= 128:
        if m % t == 0:
            return t, m // t
        t -= 128
    t = (cap // 128) * 128
    return t, pl.cdiv(m, t)            # ragged last block; Pallas masks it


def _pick_half_tile(m_half, cap=_LANE_CAP):
    """Largest 128-aligned divisor of m_half (<= cap), or None."""
    if m_half % 128 != 0:
        return None
    t = min(m_half, (cap // 128) * 128)
    while t >= 128:
        if m_half % t == 0:
            return t
        t -= 128
    return None


def _act_map(b, i):
    return (b, 0, i)


def _w_map(b, i):
    return (0, 0)


def _lane_call(kernel, acts, weights, out_channels, out_dtype=jnp.float32):
    """Batched lane-dense pointwise call.  acts: (B, C_i, M) sharing M.
    Grid = (batch, lane tiles); weights stay VMEM-resident (constant index_map
    => not re-DMA'd across grid steps)."""
    b, _, m = acts[0].shape
    tm, n_lane = _pick_tile(m)
    in_specs = [pl.BlockSpec((None, a.shape[1], tm), _act_map) for a in acts]
    in_specs += [pl.BlockSpec(w.shape, _w_map) for w in weights]
    multi = isinstance(out_channels, (tuple, list))
    chans = tuple(out_channels) if multi else (out_channels,)
    out_shape = tuple(jax.ShapeDtypeStruct((b, n, m), out_dtype) for n in chans)
    out_specs = tuple(pl.BlockSpec((None, n, tm), _act_map) for n in chans)
    if not multi:
        out_shape, out_specs = out_shape[0], out_specs[0]
    return pl.pallas_call(
        kernel, out_shape=out_shape, grid=(b, n_lane),
        in_specs=in_specs, out_specs=out_specs,
        compiler_params=_compiler_params())(*acts, *weights)


def _ref_mm(w, x):
    # plain-JAX reference with the same operand precision (bf16 in, f32 acc)
    return jnp.einsum("nk,bkm->bnm", w.astype(_BF16), x.astype(_BF16),
                      preferred_element_type=jnp.float32)


# ----------------------------------------------------------------------------
# FourierUnit / SpectralTransform / FFC forward  (NCHW, (B, C, M) flat layout)
# ----------------------------------------------------------------------------
def fourier_unit(x, w_full, use_pallas=True):
    """x: (B, C_in, H, W) real -> (B, C_out, H, W) f32.  Matches FourierUnit
    (ffc3d=False, fft_norm='ortho', no pos-encoding / SE / spatial scaling)."""
    b, c_in, h, w = x.shape
    c_out = w_full.shape[0] // 2
    ff = jnp.fft.rfftn(x.astype(jnp.float32), axes=(-2, -1), norm="ortho")
    wf = ff.shape[-1]
    mf = h * wf
    re = ff.real.reshape(b, c_in, mf)
    im = ff.imag.reshape(b, c_in, mf)
    # torch interleaves (real_c, imag_c) along channels -> split the weight in K
    w_r = w_full[:, 0::2]                  # applied to the real part
    w_i = w_full[:, 1::2]                  # applied to the imag part
    if use_pallas:
        y = _lane_call(_fu_conv_kernel, [re, im], [w_r, w_i], 2 * c_out,
                       out_dtype=_BF16)
    else:
        y = jnp.maximum(_ref_mm(w_r, re) + _ref_mm(w_i, im), 0.0).astype(_BF16)
    y = y.reshape(b, c_out, 2, h, wf).astype(jnp.float32)   # [:,:,0]=re [:,:,1]=im
    yc = jax.lax.complex(y[:, :, 0], y[:, :, 1])
    return jnp.fft.irfftn(yc, s=(h, w), axes=(-2, -1), norm="ortho")


def spectral_transform(x_g, params, use_pallas=True):
    """x_g: (B, c_g, H, W).  Returns x1:(B,c,M) bf16, fu:(B,c,M) f32 and
    lfu_half:(B,c,M/2) f32 (W-replicated only; the H replication of the LFU
    2x2 tile is folded into the tail kernel's modular index_map)."""
    b, cg, h, w = x_g.shape
    m = h * w
    w1 = params["w_conv1"]
    c = w1.shape[0]                                        # out_cg // 2
    xg_flat = x_g.reshape(b, cg, m)
    if use_pallas:
        x1 = _lane_call(_mm_relu_kernel, [xg_flat], [w1], c, out_dtype=_BF16)
    else:
        x1 = jnp.maximum(_ref_mm(w1, xg_flat), 0.0).astype(_BF16)
    x1_sp = x1.reshape(b, c, h, w)

    # global Fourier unit
    fu = fourier_unit(x1_sp, params["w_fu"], use_pallas=use_pallas)

    # local Fourier unit (enable_lfu=True): first c//4 channels, 2x2 spatial split
    split = 2
    xs = x1_sp[:, : c // 4]
    xs = jnp.concatenate(jnp.split(xs, split, axis=-2), axis=1)   # (B,c/2,h/2,w)
    xs = jnp.concatenate(jnp.split(xs, split, axis=-1), axis=1)   # (B,c,  h/2,w/2)
    lfu = fourier_unit(xs, params["w_lfu"], use_pallas=use_pallas)
    # replicate along W only; H replication happens in the tail kernel
    lfu_half = jnp.tile(lfu, (1, 1, 1, split)).reshape(b, c, m // split)
    return x1, fu.reshape(b, c, m), lfu_half


def _tail_call(xl, xg, x1, fu, lfu_half, params, out_cl, out_cg):
    b, c_l, m = xl.shape
    c_g = xg.shape[1]
    c = x1.shape[1]
    m_half = lfu_half.shape[-1]

    tm = _pick_half_tile(m_half) if m == 2 * m_half else None
    if tm is not None:
        # lfu stays at half size; its H replication is `lane_block % n_half`.
        # This also guarantees >=2 lane tiles per batch (both v7x TCs busy).
        n_half = m_half // tm
        n_lane = m // tm
        lfu_in = lfu_half
        lfu_map = lambda bi, li: (bi, 0, li % n_half)
    else:
        # awkward spatial size: fall back to materializing the full 2x2 tile
        lfu_in = jnp.concatenate([lfu_half, lfu_half], axis=-1)
        tm, n_lane = _pick_tile(m)
        lfu_map = _act_map

    in_specs = [
        pl.BlockSpec((None, c_l, tm), _act_map),
        pl.BlockSpec((None, c_g, tm), _act_map),
        pl.BlockSpec((None, c, tm), _act_map),
        pl.BlockSpec((None, c, tm), _act_map),
        pl.BlockSpec((None, c, tm), lfu_map),
        pl.BlockSpec(params["w_l2l"].shape, _w_map),
        pl.BlockSpec(params["w_g2l"].shape, _w_map),
        pl.BlockSpec(params["w_l2g"].shape, _w_map),
        pl.BlockSpec(params["w_conv2"].shape, _w_map),
    ]
    out_shape = (jax.ShapeDtypeStruct((b, out_cl, m), jnp.float32),
                 jax.ShapeDtypeStruct((b, out_cg, m), jnp.float32))
    out_specs = (pl.BlockSpec((None, out_cl, tm), _act_map),
                 pl.BlockSpec((None, out_cg, tm), _act_map))
    return pl.pallas_call(
        _ffc_tail_kernel, out_shape=out_shape, grid=(b, n_lane),
        in_specs=in_specs, out_specs=out_specs,
        compiler_params=_compiler_params(),
    )(xl, xg, x1, fu, lfu_in,
      params["w_l2l"], params["w_g2l"], params["w_l2g"], params["w_conv2"])


def ffc_bn_act_forward(x_l, x_g, params, use_pallas=True):
    # gated=False -> gates are 1; activations are Identity; norm never applied.
    b, c_l, h, w = x_l.shape
    c_g = x_g.shape[1]
    m = h * w
    out_cl = params["w_l2l"].shape[0]
    out_cg = params["w_l2g"].shape[0]

    x1, fu, lfu_half = spectral_transform(x_g, params, use_pallas=use_pallas)

    xl_flat = x_l.reshape(b, c_l, m)
    xg_flat = x_g.reshape(b, c_g, m)

    if use_pallas:
        out_l, out_g = _tail_call(xl_flat, xg_flat, x1, fu, lfu_half, params,
                                  out_cl, out_cg)
    else:
        lfu_full = jnp.concatenate([lfu_half, lfu_half], axis=-1)
        s = x1.astype(jnp.float32) + fu + lfu_full
        out_l = _ref_mm(params["w_l2l"], xl_flat) + _ref_mm(params["w_g2l"], xg_flat)
        out_g = _ref_mm(params["w_l2g"], xl_flat) + _ref_mm(params["w_conv2"], s)

    # NCHW all the way: (B, C, M) -> (B, C, H, W) is a free reshape, no transpose
    return out_l.reshape(b, out_cl, h, w), out_g.reshape(b, out_cg, h, w)


# ----------------------------------------------------------------------------
# deterministic parameter init (shapes from the module __init__)
# ----------------------------------------------------------------------------
def init_params(key, in_cl, in_cg, out_cl, out_cg):
    ks = jax.random.split(key, 7)

    def wgt(k, cout, cin):
        # stored (Cout, Cin) for the lane-dense (Cout,K)@(K,M) layout;
        # equals the PyTorch 1x1 Conv2d weight with the trailing (1,1) squeezed.
        return 0.1 * jax.random.normal(k, (cout, cin), jnp.float32)

    c = out_cg // 2
    return dict(
        w_l2l=wgt(ks[0], out_cl, in_cl),       # convl2l 1x1
        w_l2g=wgt(ks[1], out_cg, in_cl),       # convl2g 1x1
        w_g2l=wgt(ks[2], out_cl, in_cg),       # convg2l 1x1
        w_conv1=wgt(ks[3], c, in_cg),          # SpectralTransform.conv1
        w_fu=wgt(ks[4], 2 * c, 2 * c),         # FourierUnit conv (r/i interleaved)
        w_lfu=wgt(ks[5], 2 * c, 2 * c),        # LFU FourierUnit conv
        w_conv2=wgt(ks[6], out_cg, c),         # SpectralTransform.conv2
    )


if __name__ == "__main__":
    key = jax.random.PRNGKey(0)
    k_xl, k_xg, k_w = jax.random.split(key, 3)

    B, H, W = 2, 16, 16
    in_channels, out_channels = 16, 16
    ratio_gin = ratio_gout = 0.5
    in_cg = int(in_channels * ratio_gin)
    in_cl = in_channels - in_cg
    out_cg = int(out_channels * ratio_gout)
    out_cl = out_channels - out_cg

    # FFC takes a tuple (x_l, x_g) when ratio_gin > 0.
    x_l = jax.random.normal(k_xl, (B, in_cl, H, W), jnp.float32)
    x_g = jax.random.normal(k_xg, (B, in_cg, H, W), jnp.float32)
    params = init_params(k_w, in_cl, in_cg, out_cl, out_cg)

    fwd = jax.jit(lambda xl, xg, p: ffc_bn_act_forward(xl, xg, p, use_pallas=True))
    out_l, out_g = fwd(x_l, x_g, params)
    jax.block_until_ready((out_l, out_g))

    # plain-JAX reference (same math / operand precision, no Pallas)
    ref_l, ref_g = ffc_bn_act_forward(x_l, x_g, params, use_pallas=False)

    assert out_l.shape == (B, out_cl, H, W)
    assert out_g.shape == (B, out_cg, H, W)
    assert bool(jnp.all(jnp.isfinite(out_l))) and bool(jnp.all(jnp.isfinite(out_g)))
    assert jnp.allclose(out_l, ref_l, atol=1e-2, rtol=1e-2)
    assert jnp.allclose(out_g, ref_g, atol=1e-2, rtol=1e-2)

    print("KERNEL_OK")
</pallas_src>

<mosaic_0001>
module attributes {stable_mosaic.version = 11 : i64} {
  func.func @_mm_relu_kernel(%arg0: i32, %arg1: i32, %arg2: memref<1x8x256xf32, #tpu.memory_space<vmem>>, %arg3: memref<4x8xf32, #tpu.memory_space<vmem>>, %arg4: memref<1x4x256xbf16, #tpu.memory_space<vmem>>) attributes {dimension_semantics = [#tpu.dimension_semantics<parallel>, #tpu.dimension_semantics<parallel>], iteration_bounds = array<i64: 2, 1>, scalar_prefetch = 0 : i64, scratch_operands = 0 : i64, tpu.core_type = #tpu.core_type<tc>, window_params = [{transform_indices = @transform_0, window_bounds = array<i64: 1, 8, 256>}, {pipeline_mode = #tpu.pipeline_mode<synchronous>, transform_indices = @transform_1, window_bounds = array<i64: 4, 8>}, {transform_indices = @transform_2, window_bounds = array<i64: 1, 4, 256>}]} {
    %c0 = arith.constant 0 : index
    %c0_0 = arith.constant 0 : index
    %0 = vector.load %arg3[%c0, %c0_0] : memref<4x8xf32, #tpu.memory_space<vmem>>, vector<4x8xf32>
    %1 = arith.truncf %0 : vector<4x8xf32> to vector<4x8xbf16>
    %c0_1 = arith.constant 0 : index
    %c0_2 = arith.constant 0 : index
    %c0_3 = arith.constant 0 : index
    %2 = vector.load %arg2[%c0_1, %c0_2, %c0_3] : memref<1x8x256xf32, #tpu.memory_space<vmem>>, vector<1x8x256xf32>
    %3 = vector.shape_cast %2 : vector<1x8x256xf32> to vector<8x256xf32>
    %4 = arith.truncf %3 : vector<8x256xf32> to vector<8x256xbf16>
    %cst = arith.constant dense<0.000000e+00> : vector<4x256xf32>
    %5 = tpu.matmul %1, %4, %cst {dimension_numbers = #tpu.dot_dimension_numbers<[1], [0], [0], [1], [0, 0, 1, 1], [], []>} : vector<4x8xbf16>, vector<8x256xbf16>, vector<4x256xf32> -> vector<4x256xf32>
    %cst_4 = arith.constant 0.000000e+00 : f32
    %6 = vector.broadcast %cst_4 : f32 to vector<4x256xf32>
    %7 = arith.maximumf %5, %6 : vector<4x256xf32>
    %8 = arith.truncf %7 : vector<4x256xf32> to vector<4x256xbf16>
    %c0_5 = arith.constant 0 : index
    %c0_6 = arith.constant 0 : index
    %c0_7 = arith.constant 0 : index
    %9 = vector.load %arg4[%c0_5, %c0_6, %c0_7] : memref<1x4x256xbf16, #tpu.memory_space<vmem>>, vector<1x4x256xbf16>
    %10 = vector.shape_cast %9 : vector<1x4x256xbf16> to vector<4x256xbf16>
    %11 = vector.shape_cast %8 : vector<4x256xbf16> to vector<1x4x256xbf16>
    tpu.vector_store %arg4[%c0_5, %c0_6, %c0_7], %11 {strides = array<i32>} : memref<1x4x256xbf16, #tpu.memory_space<vmem>>, vector<1x4x256xbf16>,
    return
  }
  func.func @transform_0(%arg0: i32, %arg1: i32) -> (i32, i32, i32) {
    %c0_i32 = arith.constant 0 : i32
    %c0_i32_0 = arith.constant 0 : i32
    return %arg0, %c0_i32, %arg1 : i32, i32, i32
  }
  func.func @transform_1(%arg0: i32, %arg1: i32) -> (i32, i32) {
    %c0_i32 = arith.constant 0 : i32
    %c0_i32_0 = arith.constant 0 : i32
    %c0_i32_1 = arith.constant 0 : i32
    return %c0_i32, %c0_i32_0 : i32, i32
  }
  func.func @transform_2(%arg0: i32, %arg1: i32) -> (i32, i32, i32) {
    %c0_i32 = arith.constant 0 : i32
    %c0_i32_0 = arith.constant 0 : i32
    return %arg0, %c0_i32, %arg1 : i32, i32, i32
  }
}

module attributes {stable_mosaic.version = 11 : i64} {
  func.func @_fu_conv_kernel(%arg0: i32, %arg1: i32, %arg2: memref<1x4x40xf32, #tpu.memory_space<vmem>>, %arg3: memref<1x4x40xf32, #tpu.memory_space<vmem>>, %arg4: memref<8x4xf32, #tpu.memory_space<vmem>>, %arg5: memref<8x4xf32, #tpu.memory_space<vmem>>, %arg6: memref<1x8x40xbf16, #tpu.memory_space<vmem>>) attributes {dimension_semantics = [#tpu.dimension_semantics<parallel>, #tpu.dimension_semantics<parallel>], iteration_bounds = array<i64: 2, 1>, scalar_prefetch = 0 : i64, scratch_operands = 0 : i64, tpu.core_type = #tpu.core_type<tc>, window_params = [{transform_indices = @transform_0, window_bounds = array<i64: 1, 4, 40>}, {transform_indices = @transform_1, window_bounds = array<i64: 1, 4, 40>}, {pipeline_mode = #tpu.pipeline_mode<synchronous>, transform_indices = @transform_2, window_bounds = array<i64: 8, 4>}, {pipeline_mode = #tpu.pipeline_mode<synchronous>, transform_indices = @transform_3, window_bounds = array<i64: 8, 4>}, {transform_indices = @transform_4, window_bounds = array<i64: 1, 8, 40>}]} {
    %c0 = arith.constant 0 : index
    %c0_0 = arith.constant 0 : index
    %0 = vector.load %arg4[%c0, %c0_0] : memref<8x4xf32, #tpu.memory_space<vmem>>, vector<8x4xf32>
    %1 = arith.truncf %0 : vector<8x4xf32> to vector<8x4xbf16>
    %c0_1 = arith.constant 0 : index
    %c0_2 = arith.constant 0 : index
    %c0_3 = arith.constant 0 : index
    %2 = vector.load %arg2[%c0_1, %c0_2, %c0_3] : memref<1x4x40xf32, #tpu.memory_space<vmem>>, vector<1x4x40xf32>
    %3 = vector.shape_cast %2 : vector<1x4x40xf32> to vector<4x40xf32>
    %4 = arith.truncf %3 : vector<4x40xf32> to vector<4x40xbf16>
    %cst = arith.constant dense<0.000000e+00> : vector<8x40xf32>
    %5 = tpu.matmul %1, %4, %cst {dimension_numbers = #tpu.dot_dimension_numbers<[1], [0], [0], [1], [0, 0, 1, 1], [], []>} : vector<8x4xbf16>, vector<4x40xbf16>, vector<8x40xf32> -> vector<8x40xf32>
    %c0_4 = arith.constant 0 : index
    %c0_5 = arith.constant 0 : index
    %6 = vector.load %arg5[%c0_4, %c0_5] : memref<8x4xf32, #tpu.memory_space<vmem>>, vector<8x4xf32>
    %7 = arith.truncf %6 : vector<8x4xf32> to vector<8x4xbf16>
    %c0_6 = arith.constant 0 : index
    %c0_7 = arith.constant 0 : index
    %c0_8 = arith.constant 0 : index
    %8 = vector.load %arg3[%c0_6, %c0_7, %c0_8] : memref<1x4x40xf32, #tpu.memory_space<vmem>>, vector<1x4x40xf32>
    %9 = vector.shape_cast %8 : vector<1x4x40xf32> to vector<4x40xf32>
    %10 = arith.truncf %9 : vector<4x40xf32> to vector<4x40xbf16>
    %cst_9 = arith.constant dense<0.000000e+00> : vector<8x40xf32>
    %11 = tpu.matmul %7, %10, %cst_9 {dimension_numbers = #tpu.dot_dimension_numbers<[1], [0], [0], [1], [0, 0, 1, 1], [], []>} : vector<8x4xbf16>, vector<4x40xbf16>, vector<8x40xf32> -> vector<8x40xf32>
    %12 = arith.addf %5, %11 : vector<8x40xf32>
    %cst_10 = arith.constant 0.000000e+00 : f32
    %13 = vector.broadcast %cst_10 : f32 to vector<8x40xf32>
    %14 = arith.maximumf %12, %13 : vector<8x40xf32>
    %15 = arith.truncf %14 : vector<8x40xf32> to vector<8x40xbf16>
    %c0_11 = arith.constant 0 : index
    %c0_12 = arith.constant 0 : index
    %c0_13 = arith.constant 0 : index
    %16 = vector.load %arg6[%c0_11, %c0_12, %c0_13] : memref<1x8x40xbf16, #tpu.memory_space<vmem>>, vector<1x8x40xbf16>
    %17 = vector.shape_cast %16 : vector<1x8x40xbf16> to vector<8x40xbf16>
    %18 = vector.shape_cast %15 : vector<8x40xbf16> to vector<1x8x40xbf16>
    tpu.vector_store %arg6[%c0_11, %c0_12, %c0_13], %18 {strides = array<i32>} : memref<1x8x40xbf16, #tpu.memory_space<vmem>>, vector<1x8x40xbf16>,
    return
  }
  func.func @transform_0(%arg0: i32, %arg1: i32) -> (i32, i32, i32) {
    %c0_i32 = arith.constant 0 : i32
    %c0_i32_0 = arith.constant 0 : i32
    return %arg0, %c0_i32, %arg1 : i32, i32, i32
  }
  func.func @transform_1(%arg0: i32, %arg1: i32) -> (i32, i32, i32) {
    %c0_i32 = arith.constant 0 : i32
    %c0_i32_0 = arith.constant 0 : i32
    return %arg0, %c0_i32, %arg1 : i32, i32, i32
  }
  func.func @transform_2(%arg0: i32, %arg1: i32) -> (i32, i32) {
    %c0_i32 = arith.constant 0 : i32
    %c0_i32_0 = arith.constant 0 : i32
    %c0_i32_1 = arith.constant 0 : i32
    return %c0_i32, %c0_i32_0 : i32, i32
  }
  func.func @transform_3(%arg0: i32, %arg1: i32) -> (i32, i32) {
    %c0_i32 = arith.constant 0 : i32
    %c0_i32_0 = arith.constant 0 : i32
    %c0_i32_1 = arith.constant 0 : i32
    return %c0_i32, %c0_i32_0 : i32, i32
  }
  func.func @transform_4(%arg0: i32, %arg1: i32) -> (i32, i32, i32) {
    %c0_i32 = arith.constant 0 : i32
    %c0_i32_0 = arith.constant 0 : i32
    return %arg0, %c0_i32, %arg1 : i32, i32, i32
  }
}

module attributes {stable_mosaic.version = 11 : i64} {
  func.func @_fu_conv_kernel(%arg0: i32, %arg1: i32, %arg2: memref<1x4x144xf32, #tpu.memory_space<vmem>>, %arg3: memref<1x4x144xf32, #tpu.memory_space<vmem>>, %arg4: memref<8x4xf32, #tpu.memory_space<vmem>>, %arg5: memref<8x4xf32, #tpu.memory_space<vmem>>, %arg6: memref<1x8x144xbf16, #tpu.memory_space<vmem>>) attributes {dimension_semantics = [#tpu.dimension_semantics<parallel>, #tpu.dimension_semantics<parallel>], iteration_bounds = array<i64: 2, 1>, scalar_prefetch = 0 : i64, scratch_operands = 0 : i64, tpu.core_type = #tpu.core_type<tc>, window_params = [{transform_indices = @transform_0, window_bounds = array<i64: 1, 4, 144>}, {transform_indices = @transform_1, window_bounds = array<i64: 1, 4, 144>}, {pipeline_mode = #tpu.pipeline_mode<synchronous>, transform_indices = @transform_2, window_bounds = array<i64: 8, 4>}, {pipeline_mode = #tpu.pipeline_mode<synchronous>, transform_indices = @transform_3, window_bounds = array<i64: 8, 4>}, {transform_indices = @transform_4, window_bounds = array<i64: 1, 8, 144>}]} {
    %c0 = arith.constant 0 : index
    %c0_0 = arith.constant 0 : index
    %0 = vector.load %arg4[%c0, %c0_0] : memref<8x4xf32, #tpu.memory_space<vmem>>, vector<8x4xf32>
    %1 = arith.truncf %0 : vector<8x4xf32> to vector<8x4xbf16>
    %c0_1 = arith.constant 0 : index
    %c0_2 = arith.constant 0 : index
    %c0_3 = arith.constant 0 : index
    %2 = vector.load %arg2[%c0_1, %c0_2, %c0_3] : memref<1x4x144xf32, #tpu.memory_space<vmem>>, vector<1x4x144xf32>
    %3 = vector.shape_cast %2 : vector<1x4x144xf32> to vector<4x144xf32>
    %4 = arith.truncf %3 : vector<4x144xf32> to vector<4x144xbf16>
    %cst = arith.constant dense<0.000000e+00> : vector<8x144xf32>
    %5 = tpu.matmul %1, %4, %cst {dimension_numbers = #tpu.dot_dimension_numbers<[1], [0], [0], [1], [0, 0, 1, 1], [], []>} : vector<8x4xbf16>, vector<4x144xbf16>, vector<8x144xf32> -> vector<8x144xf32>
    %c0_4 = arith.constant 0 : index
    %c0_5 = arith.constant 0 : index
    %6 = vector.load %arg5[%c0_4, %c0_5] : memref<8x4xf32, #tpu.memory_space<vmem>>, vector<8x4xf32>
    %7 = arith.truncf %6 : vector<8x4xf32> to vector<8x4xbf16>
    %c0_6 = arith.constant 0 : index
    %c0_7 = arith.constant 0 : index
    %c0_8 = arith.constant 0 : index
    %8 = vector.load %arg3[%c0_6, %c0_7, %c0_8] : memref<1x4x144xf32, #tpu.memory_space<vmem>>, vector<1x4x144xf32>
    %9 = vector.shape_cast %8 : vector<1x4x144xf32> to vector<4x144xf32>
    %10 = arith.truncf %9 : vector<4x144xf32> to vector<4x144xbf16>
    %cst_9 = arith.constant dense<0.000000e+00> : vector<8x144xf32>
    %11 = tpu.matmul %7, %10, %cst_9 {dimension_numbers = #tpu.dot_dimension_numbers<[1], [0], [0], [1], [0, 0, 1, 1], [], []>} : vector<8x4xbf16>, vector<4x144xbf16>, vector<8x144xf32> -> vector<8x144xf32>
    %12 = arith.addf %5, %11 : vector<8x144xf32>
    %cst_10 = arith.constant 0.000000e+00 : f32
    %13 = vector.broadcast %cst_10 : f32 to vector<8x144xf32>
    %14 = arith.maximumf %12, %13 : vector<8x144xf32>
    %15 = arith.truncf %14 : vector<8x144xf32> to vector<8x144xbf16>
    %c0_11 = arith.constant 0 : index
    %c0_12 = arith.constant 0 : index
    %c0_13 = arith.constant 0 : index
    %16 = vector.load %arg6[%c0_11, %c0_12, %c0_13] : memref<1x8x144xbf16, #tpu.memory_space<vmem>>, vector<1x8x144xbf16>
    %17 = vector.shape_cast %16 : vector<1x8x144xbf16> to vector<8x144xbf16>
    %18 = vector.shape_cast %15 : vector<8x144xbf16> to vector<1x8x144xbf16>
    tpu.vector_store %arg6[%c0_11, %c0_12, %c0_13], %18 {strides = array<i32>} : memref<1x8x144xbf16, #tpu.memory_space<vmem>>, vector<1x8x144xbf16>,
    return
  }
  func.func @transform_0(%arg0: i32, %arg1: i32) -> (i32, i32, i32) {
    %c0_i32 = arith.constant 0 : i32
    %c0_i32_0 = arith.constant 0 : i32
    return %arg0, %c0_i32, %arg1 : i32, i32, i32
  }
  func.func @transform_1(%arg0: i32, %arg1: i32) -> (i32, i32, i32) {
    %c0_i32 = arith.constant 0 : i32
    %c0_i32_0 = arith.constant 0 : i32
    return %arg0, %c0_i32, %arg1 : i32, i32, i32
  }
  func.func @transform_2(%arg0: i32, %arg1: i32) -> (i32, i32) {
    %c0_i32 = arith.constant 0 : i32
    %c0_i32_0 = arith.constant 0 : i32
    %c0_i32_1 = arith.constant 0 : i32
    return %c0_i32, %c0_i32_0 : i32, i32
  }
  func.func @transform_3(%arg0: i32, %arg1: i32) -> (i32, i32) {
    %c0_i32 = arith.constant 0 : i32
    %c0_i32_0 = arith.constant 0 : i32
    %c0_i32_1 = arith.constant 0 : i32
    return %c0_i32, %c0_i32_0 : i32, i32
  }
  func.func @transform_4(%arg0: i32, %arg1: i32) -> (i32, i32, i32) {
    %c0_i32 = arith.constant 0 : i32
    %c0_i32_0 = arith.constant 0 : i32
    return %arg0, %c0_i32, %arg1 : i32, i32, i32
  }
}

module attributes {stable_mosaic.version = 11 : i64} {
  func.func @_ffc_tail_kernel(%arg0: i32, %arg1: i32, %arg2: memref<1x8x128xf32, #tpu.memory_space<vmem>>, %arg3: memref<1x8x128xf32, #tpu.memory_space<vmem>>, %arg4: memref<1x4x128xbf16, #tpu.memory_space<vmem>>, %arg5: memref<1x4x128xf32, #tpu.memory_space<vmem>>, %arg6: memref<1x4x128xf32, #tpu.memory_space<vmem>>, %arg7: memref<8x8xf32, #tpu.memory_space<vmem>>, %arg8: memref<8x8xf32, #tpu.memory_space<vmem>>, %arg9: memref<8x8xf32, #tpu.memory_space<vmem>>, %arg10: memref<8x4xf32, #tpu.memory_space<vmem>>, %arg11: memref<1x8x128xf32, #tpu.memory_space<vmem>>, %arg12: memref<1x8x128xf32, #tpu.memory_space<vmem>>) attributes {dimension_semantics = [#tpu.dimension_semantics<parallel>, #tpu.dimension_semantics<parallel>], iteration_bounds = array<i64: 2, 2>, scalar_prefetch = 0 : i64, scratch_operands = 0 : i64, tpu.core_type = #tpu.core_type<tc>, window_params = [{transform_indices = @transform_0, window_bounds = array<i64: 1, 8, 128>}, {transform_indices = @transform_1, window_bounds = array<i64: 1, 8, 128>}, {transform_indices = @transform_2, window_bounds = array<i64: 1, 4, 128>}, {transform_indices = @transform_3, window_bounds = array<i64: 1, 4, 128>}, {transform_indices = @transform_4, window_bounds = array<i64: 1, 4, 128>}, {pipeline_mode = #tpu.pipeline_mode<synchronous>, transform_indices = @transform_5, window_bounds = array<i64: 8, 8>}, {pipeline_mode = #tpu.pipeline_mode<synchronous>, transform_indices = @transform_6, window_bounds = array<i64: 8, 8>}, {pipeline_mode = #tpu.pipeline_mode<synchronous>, transform_indices = @transform_7, window_bounds = array<i64: 8, 8>}, {pipeline_mode = #tpu.pipeline_mode<synchronous>, transform_indices = @transform_8, window_bounds = array<i64: 8, 4>}, {transform_indices = @transform_9, window_bounds = array<i64: 1, 8, 128>}, {transform_indices = @transform_10, window_bounds = array<i64: 1, 8, 128>}]} {
    %c0 = arith.constant 0 : index
    %c0_0 = arith.constant 0 : index
    %c0_1 = arith.constant 0 : index
    %0 = vector.load %arg2[%c0, %c0_0, %c0_1] : memref<1x8x128xf32, #tpu.memory_space<vmem>>, vector<1x8x128xf32>
    %1 = vector.shape_cast %0 : vector<1x8x128xf32> to vector<8x128xf32>
    %2 = arith.truncf %1 : vector<8x128xf32> to vector<8x128xbf16>
    %c0_2 = arith.constant 0 : index
    %c0_3 = arith.constant 0 : index
    %c0_4 = arith.constant 0 : index
    %3 = vector.load %arg3[%c0_2, %c0_3, %c0_4] : memref<1x8x128xf32, #tpu.memory_space<vmem>>, vector<1x8x128xf32>
    %4 = vector.shape_cast %3 : vector<1x8x128xf32> to vector<8x128xf32>
    %5 = arith.truncf %4 : vector<8x128xf32> to vector<8x128xbf16>
    %c0_5 = arith.constant 0 : index
    %c0_6 = arith.constant 0 : index
    %c0_7 = arith.constant 0 : index
    %6 = vector.load %arg4[%c0_5, %c0_6, %c0_7] : memref<1x4x128xbf16, #tpu.memory_space<vmem>>, vector<1x4x128xbf16>
    %7 = vector.shape_cast %6 : vector<1x4x128xbf16> to vector<4x128xbf16>
    %8 = arith.extf %7 : vector<4x128xbf16> to vector<4x128xf32>
    %c0_8 = arith.constant 0 : index
    %c0_9 = arith.constant 0 : index
    %c0_10 = arith.constant 0 : index
    %9 = vector.load %arg5[%c0_8, %c0_9, %c0_10] : memref<1x4x128xf32, #tpu.memory_space<vmem>>, vector<1x4x128xf32>
    %10 = vector.shape_cast %9 : vector<1x4x128xf32> to vector<4x128xf32>
    %11 = arith.addf %8, %10 : vector<4x128xf32>
    %c0_11 = arith.constant 0 : index
    %c0_12 = arith.constant 0 : index
    %c0_13 = arith.constant 0 : index
    %12 = vector.load %arg6[%c0_11, %c0_12, %c0_13] : memref<1x4x128xf32, #tpu.memory_space<vmem>>, vector<1x4x128xf32>
    %13 = vector.shape_cast %12 : vector<1x4x128xf32> to vector<4x128xf32>
    %14 = arith.addf %11, %13 : vector<4x128xf32>
    %c0_14 = arith.constant 0 : index
    %c0_15 = arith.constant 0 : index
    %15 = vector.load %arg7[%c0_14, %c0_15] : memref<8x8xf32, #tpu.memory_space<vmem>>, vector<8x8xf32>
    %16 = arith.truncf %15 : vector<8x8xf32> to vector<8x8xbf16>
    %cst = arith.constant dense<0.000000e+00> : vector<8x128xf32>
    %17 = tpu.matmul %16, %2, %cst {dimension_numbers = #tpu.dot_dimension_numbers<[1], [0], [0], [1], [0, 0, 1, 1], [], []>} : vector<8x8xbf16>, vector<8x128xbf16>, vector<8x128xf32> -> vector<8x128xf32>
    %c0_16 = arith.constant 0 : index
    %c0_17 = arith.constant 0 : index
    %18 = vector.load %arg8[%c0_16, %c0_17] : memref<8x8xf32, #tpu.memory_space<vmem>>, vector<8x8xf32>
    %19 = arith.truncf %18 : vector<8x8xf32> to vector<8x8xbf16>
    %cst_18 = arith.constant dense<0.000000e+00> : vector<8x128xf32>
    %20 = tpu.matmul %19, %5, %cst_18 {dimension_numbers = #tpu.dot_dimension_numbers<[1], [0], [0], [1], [0, 0, 1, 1], [], []>} : vector<8x8xbf16>, vector<8x128xbf16>, vector<8x128xf32> -> vector<8x128xf32>
    %21 = arith.addf %17, %20 : vector<8x128xf32>
    %c0_19 = arith.constant 0 : index
    %c0_20 = arith.constant 0 : index
    %22 = vector.load %arg9[%c0_19, %c0_20] : memref<8x8xf32, #tpu.memory_space<vmem>>, vector<8x8xf32>
    %23 = arith.truncf %22 : vector<8x8xf32> to vector<8x8xbf16>
    %cst_21 = arith.constant dense<0.000000e+00> : vector<8x128xf32>
    %24 = tpu.matmul %23, %2, %cst_21 {dimension_numbers = #tpu.dot_dimension_numbers<[1], [0], [0], [1], [0, 0, 1, 1], [], []>} : vector<8x8xbf16>, vector<8x128xbf16>, vector<8x128xf32> -> vector<8x128xf32>
    %c0_22 = arith.constant 0 : index
    %c0_23 = arith.constant 0 : index
    %25 = vector.load %arg10[%c0_22, %c0_23] : memref<8x4xf32, #tpu.memory_space<vmem>>, vector<8x4xf32>
    %26 = arith.truncf %25 : vector<8x4xf32> to vector<8x4xbf16>
    %27 = arith.truncf %14 : vector<4x128xf32> to vector<4x128xbf16>
    %cst_24 = arith.constant dense<0.000000e+00> : vector<8x128xf32>
    %28 = tpu.matmul %26, %27, %cst_24 {dimension_numbers = #tpu.dot_dimension_numbers<[1], [0], [0], [1], [0, 0, 1, 1], [], []>} : vector<8x4xbf16>, vector<4x128xbf16>, vector<8x128xf32> -> vector<8x128xf32>
    %29 = arith.addf %24, %28 : vector<8x128xf32>
    %c0_25 = arith.constant 0 : index
    %c0_26 = arith.constant 0 : index
    %c0_27 = arith.constant 0 : index
    %30 = vector.load %arg11[%c0_25, %c0_26, %c0_27] : memref<1x8x128xf32, #tpu.memory_space<vmem>>, vector<1x8x128xf32>
    %31 = vector.shape_cast %30 : vector<1x8x128xf32> to vector<8x128xf32>
    %32 = vector.shape_cast %21 : vector<8x128xf32> to vector<1x8x128xf32>
    tpu.vector_store %arg11[%c0_25, %c0_26, %c0_27], %32 {strides = array<i32>} : memref<1x8x128xf32, #tpu.memory_space<vmem>>, vector<1x8x128xf32>,
    %c0_28 = arith.constant 0 : index
    %c0_29 = arith.constant 0 : index
    %c0_30 = arith.constant 0 : index
    %33 = vector.load %arg12[%c0_28, %c0_29, %c0_30] : memref<1x8x128xf32, #tpu.memory_space<vmem>>, vector<1x8x128xf32>
    %34 = vector.shape_cast %33 : vector<1x8x128xf32> to vector<8x128xf32>
    %35 = vector.shape_cast %29 : vector<8x128xf32> to vector<1x8x128xf32>
    tpu.vector_store %arg12[%c0_28, %c0_29, %c0_30], %35 {strides = array<i32>} : memref<1x8x128xf32, #tpu.memory_space<vmem>>, vector<1x8x128xf32>,
    return
  }
  func.func @transform_0(%arg0: i32, %arg1: i32) -> (i32, i32, i32) {
    %c0_i32 = arith.constant 0 : i32
    %c0_i32_0 = arith.constant 0 : i32
    return %arg0, %c0_i32, %arg1 : i32, i32, i32
  }
  func.func @transform_1(%arg0: i32, %arg1: i32) -> (i32, i32, i32) {
    %c0_i32 = arith.constant 0 : i32
    %c0_i32_0 = arith.constant 0 : i32
    return %arg0, %c0_i32, %arg1 : i32, i32, i32
  }
  func.func @transform_2(%arg0: i32, %arg1: i32) -> (i32, i32, i32) {
    %c0_i32 = arith.constant 0 : i32
    %c0_i32_0 = arith.constant 0 : i32
    return %arg0, %c0_i32, %arg1 : i32, i32, i32
  }
  func.func @transform_3(%arg0: i32, %arg1: i32) -> (i32, i32, i32) {
    %c0_i32 = arith.constant 0 : i32
    %c0_i32_0 = arith.constant 0 : i32
    return %arg0, %c0_i32, %arg1 : i32, i32, i32
  }
  func.func @transform_4(%arg0: i32, %arg1: i32) -> (i32, i32, i32) {
    %c1_i32 = arith.constant 1 : i32
    %c0_i32 = arith.constant 0 : i32
    %0 = arith.cmpi eq, %c1_i32, %c0_i32 : i32
    %c1_i32_0 = arith.constant 1 : i32
    %1 = arith.select %0, %c1_i32_0, %c1_i32 : i32
    %2 = arith.remsi %arg1, %1 : i32
    %c0_i32_1 = arith.constant 0 : i32
    %3 = arith.cmpi ne, %2, %c0_i32_1 : i32
    %c0_i32_2 = arith.constant 0 : i32
    %4 = arith.cmpi slt, %2, %c0_i32_2 : i32
    %c0_i32_3 = arith.constant 0 : i32
    %5 = arith.cmpi slt, %1, %c0_i32_3 : i32
    %6 = arith.xori %4, %5 : i1
    %7 = arith.andi %6, %3 : i1
    %8 = arith.addi %2, %1 : i32
    %9 = arith.select %7, %8, %2 : i32
    %c0_i32_4 = arith.constant 0 : i32
    %c0_i32_5 = arith.constant 0 : i32
    return %arg0, %c0_i32_4, %9 : i32, i32, i32
  }
  func.func @transform_5(%arg0: i32, %arg1: i32) -> (i32, i32) {
    %c0_i32 = arith.constant 0 : i32
    %c0_i32_0 = arith.constant 0 : i32
    %c0_i32_1 = arith.constant 0 : i32
    return %c0_i32, %c0_i32_0 : i32, i32
  }
  func.func @transform_6(%arg0: i32, %arg1: i32) -> (i32, i32) {
    %c0_i32 = arith.constant 0 : i32
    %c0_i32_0 = arith.constant 0 : i32
    %c0_i32_1 = arith.constant 0 : i32
    return %c0_i32, %c0_i32_0 : i32, i32
  }
  func.func @transform_7(%arg0: i32, %arg1: i32) -> (i32, i32) {
    %c0_i32 = arith.constant 0 : i32
    %c0_i32_0 = arith.constant 0 : i32
    %c0_i32_1 = arith.constant 0 : i32
    return %c0_i32, %c0_i32_0 : i32, i32
  }
  func.func @transform_8(%arg0: i32, %arg1: i32) -> (i32, i32) {
    %c0_i32 = arith.constant 0 : i32
    %c0_i32_0 = arith.constant 0 : i32
    %c0_i32_1 = arith.constant 0 : i32
    return %c0_i32, %c0_i32_0 : i32, i32
  }
  func.func @transform_9(%arg0: i32, %arg1: i32) -> (i32, i32, i32) {
    %c0_i32 = arith.constant 0 : i32
    %c0_i32_0 = arith.constant 0 : i32
    return %arg0, %c0_i32, %arg1 : i32, i32, i32
  }
  func.func @transform_10(%arg0: i32, %arg1: i32) -> (i32, i32, i32) {
    %c0_i32 = arith.constant 0 : i32
    %c0_i32_0 = arith.constant 0 : i32
    return %arg0, %c0_i32, %arg1 : i32, i32, i32
  }
}

</mosaic_0001>

<bundles_post_ra>
// kernel: _lambda_.4
= control target key start
LH: loop header
LB: loop body
LE: loop exit
PB: predicated region body
PF: predicated region fallthrough
CT: control target
= control target key end

     0   :  { %s427_s9 = smov 0   ;;  %s429_s10 = smov 0   ;;  %s463_s0 = inlined_call_operand.vmem [shape: f32[2,8,256], index: 0, kind: input, shape index: {}]   ;;  %s464_s1 = inlined_call_operand.vmem [shape: f32[4,8], index: 1, kind: input, shape index: {}]   ;;  %s465_s2 = inlined_call_operand.vmem [shape: bf16[2,4,256], index: 2, kind: output, shape index: {}]  }
   0x1   :  { %s431_s11 = smov 0  }
   0x2 LB: > { %s24_s12 = sadd.s32 1, %s405_s10  ;;  %p349_p0 = scmp.ge.s32.totalorder %s409_s11, 1  ;;  %s409_s11 = sphi %s431_s11, %s12_s11   ;;  %s405_s10 = sphi %s429_s10, %s467_s10   ;;  %s401_s9 = sphi %s427_s9, %s466_s9  }
   0x3   : > { %p26_p1 = scmp.ge.s32.totalorder %s24_s12, 2  ;;  %p133_p2 = scmp.lt.s32.totalorder %s409_s11, 3 }
   0x5   : > { %s469_s12 = smov (%p26_p1, %s24_s12), 0  ;;  %p134_p3 = pnand %p349_p0, %p133_p2 }
   0x6   : > { %p164_p4 = scmp.lt.s32.totalorder (!%p134_p3), %s401_s9, 1  ;;  %v411_v0 = vmov (!%p134_p3), 0   ;;  %vm194_vm0 = vcmask (!%p134_p3), 1043456   ;;  %v184_v3 = vld [vmem:[%s464_s1] sm:$0xf] (!%p134_p3)  ;;  %vm190_vm1 = vcmask (!%p134_p3), 64512  }
   0x7   : > { %137 = sbr.rel (%p134_p3) target bundleno = 242 (0xf2), region = 28  ;;  %233 = vmatprep.mubr.bf16.mxu0 (!%p134_p3), %v411_v0  ;;  %v185_v7 = vpack.c.bf16 (!%p134_p3), %v184_v3, %v184_v3 }
   0xe   : > { %s471_s9 = smov (!%p164_p4, %s401_s9), 1 }
   0xf   : > { %s360_s13 = sshll.u32 %s471_s9, 4  ;;  %s361_s19 = sshll.u32 %s471_s9, 2 }
  0x10   : > { %s171_s16 = scalar_lea.vmem %s463_s0, %s360_s13  ;;  %s181_s22 = scalar_lea.vmem %s465_s2, %s361_s19 }
  0x11   : > { %v187_v1 = vld [vmem:[%s171_s16 + $0x8] sm:$0xff]  ;;  %v186_v2 = vld [vmem:[%s171_s16] sm:$0xff] }
  0x12   : > { %v189_v4 = vpack.c.bf16 %v187_v1, %v187_v1  ;;  %v188_v5 = vpack.c.bf16 %v186_v2, %v186_v2 }
  0x14   : > { %354 = vmatprep.subr.msk.bf16.mxu0 %vm194_vm0, %v189_v4  ;;  %v196_v6 = vsel %vm194_vm0, %v188_v5, 0 }
  0x15   : > { %202 = vmatpush1.bf16.msra.mxu0 %v196_v6 }
  0x18   : > { %355 = vmatmul.mubr.msk.bf16.vlgmr.msra.gmra.mrb[0].mxu0 %vm190_vm1, %v185_v7 }
  0xeb   : > { %v235_v8 = vpop.f32.mrb[0].mxu0 }
  0xec   : > { %v242_v9 = vmax.f32 %v235_v8, 0.0  ;;  %v237_v10 = vpop.f32.mrb[1].mxu0 }
  0xed   : > { %v243_v11 = vmax.f32 %v237_v10, 0.0  ;;  %v239_v12 = vpop.f32.mrb[2].mxu0 }
  0xee   : > { %v240_v13 = vpop.f32.mrb[3].mxu0 }
  0xef   : > { %v356_v14 = vpack.c.bf16 %v243_v11, %v242_v9 }
  0xf1   : > { %357 = vst.sshfl [vmem:[%s181_s22] sm:$0x33 pattern:$0x76325410] %v356_v14 }
  0xf2 PF: > { %s12_s11 = sadd.s32 1, %s409_s11   ;;  %s466_s9 = smov %s405_s10 }
  0xf3   : > { %p9_p5 = scmp.ge.s32.totalorder %s12_s11, 4   ;;  %s467_s10 = smov %s469_s12 }
  0xf5   :  { %11 = sbr.rel (!%p9_p5) target bundleno = 2 (0x2), region = 58 }

// kernel: _lambda_.6
= control target key start
LH: loop header
LB: loop body
LE: loop exit
PB: predicated region body
PF: predicated region fallthrough
CT: control target
= control target key end

     0   :  { %s554_s15 = smov 0   ;;  %s556_s16 = smov 0   ;;  %s601_s0 = inlined_call_operand.vmem [shape: f32[2,4,40], index: 0, kind: input, shape index: {}]   ;;  %s602_s1 = inlined_call_operand.vmem [shape: f32[2,4,40], index: 1, kind: input, shape index: {}]   ;;  %s603_s2 = inlined_call_operand.vmem [shape: f32[8,4], index: 2, kind: input, shape index: {}]   ;;  %s604_s3 = inlined_call_operand.vmem [shape: f32[8,4], index: 3, kind: input, shape index: {}]   ;;  %s605_s4 = inlined_call_operand.vmem [shape: bf16[2,8,40], index: 4, kind: output, shape index: {}]  }
   0x1   :  { %s558_s17 = smov 0  }
   0x2 LB: > { %s26_s18 = sadd.s32 1, %s521_s16  ;;  %p452_p0 = scmp.ge.s32.totalorder %s525_s17, 1  ;;  %s525_s17 = sphi %s558_s17, %s14_s17   ;;  %s521_s16 = sphi %s556_s16, %s607_s16   ;;  %s517_s15 = sphi %s554_s15, %s606_s15  }
   0x3   : > { %p28_p1 = scmp.ge.s32.totalorder %s26_s18, 2  ;;  %p194_p2 = scmp.lt.s32.totalorder %s525_s17, 3 }
   0x5   : > { %s609_s18 = smov (%p28_p1, %s26_s18), 0  ;;  %p195_p3 = pnand %p452_p0, %p194_p2 }
   0x6   : > { %p231_p4 = scmp.lt.s32.totalorder (!%p195_p3), %s517_s15, 1  ;;  %v527_v0 = vmov (!%p195_p3), 0.0   ;;  %vm528_vm0 = vmmov (!%p195_p3), 0   ;;  %vm265_vm1 = vcmask (!%p195_p3), 1041408   ;;  %v257_v2 = vld [vmem:[%s604_s3] sm:$0xff] (!%p195_p3)  ;;  %vm261_vm2 = vcmask (!%p195_p3), 31744  }
   0x7   : > { %198 = sbr.rel (%p195_p3) target bundleno = 244 (0xf4), region = 36  ;;  %464 = vmatprep.subr.bf16.mxu1 (!%p195_p3), %v527_v0  ;;  %470 = vmatprep.subr.bf16.mxu0 (!%p195_p3), %v527_v0  ;;  %v253_v5 = vld [vmem:[%s603_s2] sm:$0xff] (!%p195_p3)  ;;  %v258_v8 = vpack.c.bf16 (!%p195_p3), %v257_v2, %v257_v2  ;;  %vm357_vm3 = vcmask (!%p195_p3), 322560  }
   0x8   : > { %466 = vmatprep.mubr.msk.bf16.mxu1 (!%p195_p3), %vm528_vm0, %v527_v0  ;;  %472 = vmatprep.mubr.msk.bf16.mxu0 (!%p195_p3), %vm528_vm0, %v527_v0  ;;  %v254_v10 = vpack.c.bf16 (!%p195_p3), %v253_v5, %v253_v5 }
   0xe   : > { %s611_s15 = smov (!%p231_p4, %s517_s15), 1 }
   0xf   : > { %s572_s19 = sshll.u32 %s611_s15, 2 }
  0x10   : > { %s244_s22 = scalar_lea.vmem %s602_s1, %s572_s19  ;;  %s237_s25 = scalar_lea.vmem %s601_s0, %s572_s19 }
  0x11   : > { %v259_v1 = vld [vmem:[%s244_s22] sm:$0xf]  ;;  %s251_s6 = scalar_lea.vmem %s605_s4, %s572_s19 }
  0x12   : > { %v260_v3 = vpack.c.bf16 %v259_v1, %v259_v1  ;;  %v255_v4 = vld [vmem:[%s237_s25] sm:$0xf] }
  0x13   : > { %v256_v6 = vpack.c.bf16 %v255_v4, %v255_v4 }
  0x14   : > { %v267_v7 = vsel %vm265_vm1, %v260_v3, 0 }
  0x15   : > { %465 = vmatpush3.bf16.msra.mxu1 %v267_v7  ;;  %v313_v9 = vsel %vm265_vm1, %v256_v6, 0 }
  0x16   : > { %471 = vmatpush3.bf16.msra.mxu0 %v313_v9 }
  0x18   : > { %467 = vmatmul.mubr.msk.bf16.vlgmr.msra.gmra.mrb[0].mxu1 %vm261_vm2, %v258_v8 }
  0x19   : > { %473 = vmatmul.mubr.msk.bf16.vlgmr.msra.gmra.mrb[0].mxu0 %vm261_vm2, %v254_v10 }
  0xeb   : > { %v303_v11 = vpop.f32.mrb[0].mxu1 }
  0xec   : > { %v349_v12 = vpop.f32.mrb[0].mxu0  ;;  %v468_v13 = vpop.f32.mrb[1].mxu1 }
  0xed   : > { %v350_v14 = vadd.f32 %v349_v12, %v303_v11  ;;  %v474_v15 = vpop.f32.mrb[1].mxu0  ;;  %v306_v16 = vpop.f32.mrb[2].mxu1 }
  0xee   : > { %v352_v17 = vpop.f32.mrb[2].mxu0  ;;  %v469_v18 = vpop.f32.mrb[3].mxu1 }
  0xef   : > { %v355_v19 = vmax.f32 %v350_v14, 0.0  ;;  %v475_v20 = vpop.f32.mrb[3].mxu0 }
  0xf1   : > { %v356_v21 = vpack.c.bf16 %v355_v19, %v355_v19 }
  0xf3   : > { %358 = vst.msk [vmem:[%s251_s6] sm:$0xf] %vm357_vm3, %v356_v21 }
  0xf4 PF: > { %s14_s17 = sadd.s32 1, %s525_s17   ;;  %s606_s15 = smov %s521_s16 }
  0xf5   : > { %p11_p5 = scmp.ge.s32.totalorder %s14_s17, 4   ;;  %s607_s16 = smov %s609_s18 }
  0xf7   :  { %13 = sbr.rel (!%p11_p5) target bundleno = 2 (0x2), region = 69 }

// kernel: reverse.1
= control target key start
LH: loop header
LB: loop body
LE: loop exit
PB: predicated region body
PF: predicated region fallthrough
CT: control target
= control target key end

     0   :  { %v79_v8 = vld [vmem:[#allocation1 + $0x38] sm:$0xf]  ;;  %v89_v9 = vld [vmem:[#allocation1 + $0x30] sm:$0xf]  ;;  %v99_v10 = vld [vmem:[#allocation1 + $0x28] sm:$0xf]  ;;  %v156_v12 = vlaneseq  ;;  %s487_s0 = inlined_call_operand.vmem [shape: f32[2,4,8,3], index: 0, kind: input, shape index: {}]   ;;  %s488_s1 = inlined_call_operand.vmem [shape: f32[2,4,8,3], index: 1, kind: output, shape index: {}]  }
   0x1   :  { %v18_v0 = vld [vmem:[%s487_s0] sm:$0xf]  ;;  %v20_v1 = vld [vmem:[%s487_s0 + $0x4] sm:$0xf]  ;;  %v22_v2 = vld [vmem:[%s487_s0 + $0x8] sm:$0xf] }
   0x2   :  { %19 = vst [vmem:[#allocation1 + $0x4] sm:$0xf] %v18_v0  ;;  %21 = vst [vmem:[#allocation1 + $0xc] sm:$0xf] %v20_v1  ;;  %v24_v3 = vld [vmem:[%s487_s0 + $0xc] sm:$0xf] }
   0x3   :  { %23 = vst [vmem:[#allocation1 + $0x14] sm:$0xf] %v22_v2  ;;  %v26_v4 = vld [vmem:[%s487_s0 + $0x10] sm:$0xf]  ;;  %v28_v5 = vld [vmem:[%s487_s0 + $0x14] sm:$0xf] }
   0x4   :  { %25 = vst [vmem:[#allocation1 + $0x1c] sm:$0xf] %v24_v3  ;;  %27 = vst [vmem:[#allocation1 + $0x24] sm:$0xf] %v26_v4  ;;  %v30_v6 = vld [vmem:[%s487_s0 + $0x18] sm:$0xf] }
   0x5   :  { %29 = vst [vmem:[#allocation1 + $0x2c] sm:$0xf] %v28_v5  ;;  %v32_v7 = vld [vmem:[%s487_s0 + $0x1c] sm:$0xf]  ;;  %31 = vst [vmem:[#allocation1 + $0x34] sm:$0xf] %v30_v6 }
   0x6   :  { %33 = vst [vmem:[#allocation1 + $0x3c] sm:$0xf] %v32_v7  ;;  %81 = vst [vmem:[#allocation0 + $0x70] sm:$0xf] %v79_v8  ;;  %v109_v11 = vld [vmem:[#allocation1 + $0x20] sm:$0xf] }
   0x7   :  { %91 = vst [vmem:[#allocation0 + $0x60] sm:$0xf] %v89_v9  ;;  %101 = vst [vmem:[#allocation0 + $0x50] sm:$0xf] %v99_v10  ;;  %v119_v13 = vld [vmem:[#allocation1 + $0x18] sm:$0xf] }
   0x8   :  { %111 = vst [vmem:[#allocation0 + $0x40] sm:$0xf] %v109_v11  ;;  %v129_v14 = vld [vmem:[#allocation1 + $0x10] sm:$0xf]  ;;  %v139_v15 = vld [vmem:[#allocation1 + $0x8] sm:$0xf] }
   0x9   :  { %121 = vst [vmem:[#allocation0 + $0x30] sm:$0xf] %v119_v13  ;;  %131 = vst [vmem:[#allocation0 + $0x20] sm:$0xf] %v129_v14  ;;  %v146_v16 = vld [vmem:[#allocation1] sm:$0xf] }
   0xa   :  { %141 = vst [vmem:[#allocation0 + $0x10] sm:$0xf] %v139_v15  ;;  %147 = vst [vmem:[#allocation0] sm:$0xf] %v146_v16  ;;  %v456_v17 = vshrl.u32 %v156_v12, 7 }
   0xb   :  { %v124_v18 = vld [vmem:[#allocation1 + $0x14] sm:$0xf]  ;;  %v134_v19 = vld [vmem:[#allocation1 + $0xc] sm:$0xf]  ;;  %v143_v20 = vld [vmem:[#allocation1 + $0x4] sm:$0xf] }
   0xc   :  { %v94_v21 = vld [vmem:[#allocation1 + $0x2c] sm:$0xf]  ;;  %v104_v22 = vld [vmem:[#allocation1 + $0x24] sm:$0xf]  ;;  %v114_v23 = vld [vmem:[#allocation1 + $0x1c] sm:$0xf] }
   0xd   :  { %126 = vst [vmem:[#allocation0 + $0x28] sm:$0xf] %v124_v18  ;;  %136 = vst [vmem:[#allocation0 + $0x18] sm:$0xf] %v134_v19  ;;  %v74_v24 = vld [vmem:[#allocation1 + $0x3c] sm:$0xf] }
   0xe   :  { %145 = vst [vmem:[#allocation0 + $0x8] sm:$0xf] %v143_v20  ;;  %v84_v25 = vld [vmem:[#allocation1 + $0x34] sm:$0xf]  ;;  %96 = vst [vmem:[#allocation0 + $0x58] sm:$0xf] %v94_v21 }
   0xf   :  { %106 = vst [vmem:[#allocation0 + $0x48] sm:$0xf] %v104_v22  ;;  %116 = vst [vmem:[#allocation0 + $0x38] sm:$0xf] %v114_v23  ;;  %v247_v26 = vld [vmem:[#allocation0 + $0x77] ss:$-1 sm:$0xff] }
  0x10   :  { %76 = vst [vmem:[#allocation0 + $0x78] sm:$0xf] %v74_v24  ;;  %86 = vst [vmem:[#allocation0 + $0x68] sm:$0xf] %v84_v25  ;;  %v205_v27 = vld [vmem:[#allocation0 + $0x47] ss:$-1 sm:$0xff] }
  0x11   :  { %v219_v28 = vld [vmem:[#allocation0 + $0x57] ss:$-1 sm:$0xff]  ;;  %v233_v29 = vld [vmem:[#allocation0 + $0x67] ss:$-1 sm:$0xff]  ;;  %v206_v37 = vrot.slane %v205_v27, 5  ;;  %v248_v41 = vrot.slane %v247_v26, 5 }
  0x12   :  { %v163_v30 = vld [vmem:[#allocation0 + $0x17] ss:$-1 sm:$0xff]  ;;  %v177_v31 = vld [vmem:[#allocation0 + $0x27] ss:$-1 sm:$0xff]  ;;  %v220_v39 = vrot.slane %v219_v28, 5  ;;  %v234_v40 = vrot.slane %v233_v29, 5 }
  0x13   :  { %v191_v32 = vld [vmem:[#allocation0 + $0x37] ss:$-1 sm:$0xff]  ;;  %v149_v33 = vld [vmem:[#allocation0 + $0x7] ss:$-1 sm:$0xff]  ;;  %v164_v34 = vrot.slane %v163_v30, 5  ;;  %v178_v35 = vrot.slane %v177_v31, 5 }
  0x14   :  { %v192_v36 = vrot.slane %v191_v32, 5  ;;  %v150_v38 = vrot.slane %v149_v33, 5  ;;  %vm158_vm0 = vcmp.lt.s32.totalorder %v456_v17, 3  ;;  %207 = vst [vmem:[#allocation2 + $0x20] sm:$0xff] %v206_v37  ;;  %v168_v43 = vld [vmem:[#allocation0 + $0x1f] ss:$-1 sm:$0xff] }
  0x15   :  { %165 = vst [vmem:[#allocation2 + $0x8] sm:$0xff] %v164_v34  ;;  %179 = vst [vmem:[#allocation2 + $0x10] sm:$0xff] %v178_v35  ;;  %v154_v42 = vld [vmem:[#allocation0 + $0xf] ss:$-1 sm:$0xff]  ;;  %v169_v46 = vrot.slane %v168_v43, 5 }
  0x16   :  { %193 = vst [vmem:[#allocation2 + $0x18] sm:$0xff] %v192_v36  ;;  %151 = vst [vmem:[#allocation2] sm:$0xff] %v150_v38  ;;  %v182_v44 = vld [vmem:[#allocation0 + $0x2f] ss:$-1 sm:$0xff]  ;;  %v155_v45 = vrot.slane %v154_v42, 5 }
  0x17   :  { %221 = vst [vmem:[#allocation2 + $0x28] sm:$0xff] %v220_v39  ;;  %235 = vst [vmem:[#allocation2 + $0x30] sm:$0xff] %v234_v40  ;;  %v183_v47 = vrot.slane %v182_v44, 5  ;;  %v196_v48 = vld [vmem:[#allocation0 + $0x3f] ss:$-1 sm:$0xff] }
  0x18   :  { %249 = vst [vmem:[#allocation2 + $0x38] sm:$0xff] %v248_v41  ;;  %v197_v49 = vrot.slane %v196_v48, 5  ;;  %v210_v50 = vld [vmem:[#allocation0 + $0x4f] ss:$-1 sm:$0xff]  ;;  %v224_v51 = vld [vmem:[#allocation0 + $0x5f] ss:$-1 sm:$0xff] }
  0x19   :  { %159 = vst.msk [vmem:[#allocation2] sm:$0xff] %vm158_vm0, %v155_v45  ;;  %173 = vst.msk [vmem:[#allocation2 + $0x8] sm:$0xff] %vm158_vm0, %v169_v46  ;;  %v211_v52 = vrot.slane %v210_v50, 5  ;;  %v225_v53 = vrot.slane %v224_v51, 5  ;;  %v238_v54 = vld [vmem:[#allocation0 + $0x6f] ss:$-1 sm:$0xff] }
  0x1a   :  { %187 = vst.msk [vmem:[#allocation2 + $0x10] sm:$0xff] %vm158_vm0, %v183_v47  ;;  %v252_v55 = vld [vmem:[#allocation0 + $0x7f] ss:$-1 sm:$0xff]  ;;  %201 = vst.msk [vmem:[#allocation2 + $0x18] sm:$0xff] %vm158_vm0, %v197_v49  ;;  %v239_v56 = vrot.slane %v238_v54, 5 }
  0x1b   :  { %v253_v57 = vrot.slane %v252_v55, 5  ;;  %215 = vst.msk [vmem:[#allocation2 + $0x20] sm:$0xff] %vm158_vm0, %v211_v52  ;;  %229 = vst.msk [vmem:[#allocation2 + $0x28] sm:$0xff] %vm158_vm0, %v225_v53 }
  0x1c   :  { %243 = vst.msk [vmem:[#allocation2 + $0x30] sm:$0xff] %vm158_vm0, %v239_v56 }
  0x1d   :  { %257 = vst.msk [vmem:[#allocation2 + $0x38] sm:$0xff] %vm158_vm0, %v253_v57 }
  0x20   :  { %v261_v58 = vld [vmem:[#allocation2] sm:$0xf]  ;;  %v265_v59 = vld [vmem:[#allocation2 + $0x8] sm:$0xf] }
  0x21   :  { %v270_v60 = vld [vmem:[#allocation2 + $0x10] sm:$0xf]  ;;  %263 = vst [vmem:[#allocation3] sm:$0xf] %v261_v58  ;;  %268 = vst [vmem:[#allocation3 + $0x4] sm:$0xf] %v265_v59 }
  0x22   :  { %274 = vst [vmem:[#allocation3 + $0x8] sm:$0xf] %v270_v60  ;;  %v276_v61 = vld [vmem:[#allocation2 + $0x18] sm:$0xf]  ;;  %v282_v62 = vld [vmem:[#allocation2 + $0x20] sm:$0xf] }
  0x23   :  { %280 = vst [vmem:[#allocation3 + $0xc] sm:$0xf] %v276_v61  ;;  %v288_v63 = vld [vmem:[#allocation2 + $0x28] sm:$0xf]  ;;  %286 = vst [vmem:[#allocation3 + $0x10] sm:$0xf] %v282_v62 }
  0x24   :  { %292 = vst [vmem:[#allocation3 + $0x14] sm:$0xf] %v288_v63  ;;  %v294_v0 = vld [vmem:[#allocation2 + $0x30] sm:$0xf]  ;;  %v300_v1 = vld [vmem:[#allocation2 + $0x38] sm:$0xf] }
  0x25   :  { %298 = vst [vmem:[#allocation3 + $0x18] sm:$0xf] %v294_v0  ;;  %304 = vst [vmem:[#allocation3 + $0x1c] sm:$0xf] %v300_v1 }
  0x28   :  { %v320_v2 = vld [vmem:[#allocation3] sm:$0xff]  }
  0x29   :  { %321 = vst [vmem:[%s488_s1] sm:$0xff] %v320_v2  }
  0x2a   :  { %v324_v3 = vld [vmem:[#allocation3 + $0x8] sm:$0xff]  }
  0x2b   :  { %325 = vst [vmem:[%s488_s1 + $0x8] sm:$0xff] %v324_v3   ;;  %v328_v4 = vld [vmem:[#allocation3 + $0x10] sm:$0xff]  }
  0x2c   :  { %329 = vst [vmem:[%s488_s1 + $0x10] sm:$0xff] %v328_v4   ;;  %v332_v5 = vld [vmem:[#allocation3 + $0x18] sm:$0xff]  }
  0x2d   :  { %333 = vst [vmem:[%s488_s1 + $0x18] sm:$0xff] %v332_v5  }

// kernel: tile.9
= control target key start
LH: loop header
LB: loop body
LE: loop exit
PB: predicated region body
PF: predicated region fallthrough
CT: control target
= control target key end

     0   :  { %vm323_vm0 = vcmask 1041409   ;;  %vm327_vm1 = vcmask 1042434   ;;  %vm331_vm2 = vcmask 1043459   ;;  %vm335_vm3 = vcmask 1044484   ;;  %s1045_s13 = smov 120   ;;  %s1046_s26 = smov 104   ;;  %s1380_s0 = inlined_call_operand.vmem [shape: f32[2,4,8,2,8], index: 0, kind: input, shape index: {}]   ;;  %s1381_s1 = inlined_call_operand.vmem [shape: f32[2,4,128], index: 1, kind: output, shape index: {}]  }
   0x1   :  { %v966_v0 = vld [vmem:[%s1380_s0 + $0x7e] sm:$0x3]  ;;  %v974_v1 = vld [vmem:[%s1380_s0 + $0x6e] sm:$0x3]  ;;  %v967_v8 = vld [vmem:[%s1380_s0 + $0x7c] sm:$0x3] }
   0x2   :  { %v982_v2 = vld [vmem:[%s1380_s0 + $0x5e] sm:$0x3]  ;;  %8 = vst [vmem:[#allocation1 + $0x1f8] sm:$0x3] %v966_v0  ;;  %48 = vst [vmem:[#allocation1 + $0x1b8] sm:$0x3] %v974_v1 }
   0x3   :  { %88 = vst [vmem:[#allocation1 + $0x178] sm:$0x3] %v982_v2  ;;  %v990_v3 = vld [vmem:[%s1380_s0 + $0x4e] sm:$0x3]  ;;  %v998_v4 = vld [vmem:[%s1380_s0 + $0x3e] sm:$0x3] }
   0x4   :  { %v1006_v5 = vld [vmem:[%s1380_s0 + $0x2e] sm:$0x3]  ;;  %128 = vst [vmem:[#allocation1 + $0x138] sm:$0x3] %v990_v3  ;;  %168 = vst [vmem:[#allocation1 + $0xf8] sm:$0x3] %v998_v4 }
   0x5   :  { %208 = vst [vmem:[#allocation1 + $0xb8] sm:$0x3] %v1006_v5  ;;  %v1014_v6 = vld [vmem:[%s1380_s0 + $0x1e] sm:$0x3]  ;;  %v1022_v7 = vld [vmem:[%s1380_s0 + $0xe] sm:$0x3] }
   0x6   :  { %248 = vst [vmem:[#allocation1 + $0x78] sm:$0x3] %v1014_v6  ;;  %288 = vst [vmem:[#allocation1 + $0x38] sm:$0x3] %v1022_v7  ;;  %v975_v9 = vld [vmem:[%s1380_s0 + $0x6c] sm:$0x3] }
   0x7   :  { %13 = vst [vmem:[#allocation1 + $0x1f0] sm:$0x3] %v967_v8  ;;  %53 = vst [vmem:[#allocation1 + $0x1b0] sm:$0x3] %v975_v9  ;;  %v983_v10 = vld [vmem:[%s1380_s0 + $0x5c] sm:$0x3] }
   0x8   :  { %v991_v11 = vld [vmem:[%s1380_s0 + $0x4c] sm:$0x3]  ;;  %v999_v12 = vld [vmem:[%s1380_s0 + $0x3c] sm:$0x3]  ;;  %93 = vst [vmem:[#allocation1 + $0x170] sm:$0x3] %v983_v10 }
   0x9   :  { %133 = vst [vmem:[#allocation1 + $0x130] sm:$0x3] %v991_v11  ;;  %173 = vst [vmem:[#allocation1 + $0xf0] sm:$0x3] %v999_v12  ;;  %v1007_v13 = vld [vmem:[%s1380_s0 + $0x2c] sm:$0x3] }
   0xa   :  { %v1015_v14 = vld [vmem:[%s1380_s0 + $0x1c] sm:$0x3]  ;;  %v1023_v15 = vld [vmem:[%s1380_s0 + $0xc] sm:$0x3]  ;;  %213 = vst [vmem:[#allocation1 + $0xb0] sm:$0x3] %v1007_v13 }
   0xb   :  { %253 = vst [vmem:[#allocation1 + $0x70] sm:$0x3] %v1015_v14  ;;  %293 = vst [vmem:[#allocation1 + $0x30] sm:$0x3] %v1023_v15  ;;  %v968_v16 = vld [vmem:[%s1380_s0 + $0x7a] sm:$0x3] }
   0xc   :  { %v976_v17 = vld [vmem:[%s1380_s0 + $0x6a] sm:$0x3]  ;;  %vm339_vm4 = vcmask 1045509   ;;  %vm343_vm5 = vcmask 1046534   ;;  %vm347_vm6 = vcmask 1047559   ;;  %s1047_s27 = smov 112  }
   0xd   :  { %18 = vst [vmem:[#allocation1 + $0x1e8] sm:$0x3] %v968_v16  ;;  %58 = vst [vmem:[#allocation1 + $0x1a8] sm:$0x3] %v976_v17  ;;  %v360_v18 = vld [vmem:[#allocation1 + $0xb7] sm:$0x4]  }
   0xe   :  { %v364_v19 = vld [vmem:[#allocation1 + $0xf6] sm:$0x8]   ;;  %v390_v23 = vld [vmem:[#allocation1 + $0x38] sm:$0x1]   ;;  %v448_v46 = vld [vmem:[#allocation1 + $0x1ab] sm:$0x40]  }
   0xf   :  { %v368_v20 = vld [vmem:[#allocation1 + $0x135] sm:$0x10]   ;;  %v392_v25 = vld [vmem:[#allocation1 + $0x77] sm:$0x2]   ;;  %v444_v42 = vld [vmem:[#allocation1 + $0x16c] sm:$0x20]  }
  0x10   :  { %v354_v21 = vld [vmem:[#allocation1 + $0x39] sm:$0x1]   ;;  %v396_v26 = vld [vmem:[#allocation1 + $0xb6] sm:$0x4]   ;;  %v394_v31 = vsel %vm323_vm0, %v392_v25, %v390_v23  ;;  %v436_v35 = vld [vmem:[#allocation1 + $0xee] sm:$0x8]  }
  0x11   :  { %v356_v22 = vld [vmem:[#allocation1 + $0x78] sm:$0x2]   ;;  %v400_v27 = vld [vmem:[#allocation1 + $0xf5] sm:$0x8]   ;;  %v440_v36 = vld [vmem:[#allocation1 + $0x12d] sm:$0x10]   ;;  %v398_v37 = vsel %vm327_vm1, %v396_v26, %v394_v31 }
  0x12   :  { %v358_v24 = vsel %vm323_vm0, %v356_v22, %v354_v21  ;;  %v372_v29 = vld [vmem:[#allocation1 + $0x174] sm:$0x20]   ;;  %v404_v32 = vld [vmem:[#allocation1 + $0x134] sm:$0x10]   ;;  %v426_v39 = vld [vmem:[#allocation1 + $0x31] sm:$0x1]   ;;  %v402_v43 = vsel %vm331_vm2, %v400_v27, %v398_v37 }
  0x13   :  { %v362_v28 = vsel %vm327_vm1, %v360_v18, %v358_v24  ;;  %v376_v30 = vld [vmem:[#allocation1 + $0x1b3] sm:$0x40]   ;;  %v428_v40 = vld [vmem:[#allocation1 + $0x70] sm:$0x2]   ;;  %v406_v47 = vsel %vm335_vm3, %v404_v32, %v402_v43  ;;  %v408_v48 = vld [vmem:[#allocation1 + $0x173] sm:$0x20]  }
  0x14   :  { %v366_v33 = vsel %vm331_vm2, %v364_v19, %v362_v28  ;;  %v380_v34 = vld [vmem:[#allocation1 + $0x1f2] sm:$0x80]   ;;  %v432_v41 = vld [vmem:[#allocation1 + $0xaf] sm:$0x4]   ;;  %v430_v45 = vsel %vm323_vm0, %v428_v40, %v426_v39  ;;  %v412_v49 = vld [vmem:[#allocation1 + $0x1b2] sm:$0x40]   ;;  %v410_v53 = vsel %vm339_vm4, %v408_v48, %v406_v47 }
  0x15   :  { %v370_v38 = vsel %vm335_vm3, %v368_v20, %v366_v33  ;;  %v416_v50 = vld [vmem:[#allocation1 + $0x1f1] sm:$0x80]   ;;  %v434_v52 = vsel %vm327_vm1, %v432_v41, %v430_v45  ;;  %v462_v54 = vld [vmem:[#allocation1 + $0x30] sm:$0x1]   ;;  %v452_v59 = vld [vmem:[#allocation1 + $0x1ea] sm:$0x80]   ;;  %v414_v60 = vsel %vm343_vm5, %v412_v49, %v410_v53 }
  0x16   :  { %v374_v44 = vsel %vm339_vm4, %v372_v29, %v370_v38  ;;  %v464_v55 = vld [vmem:[#allocation1 + $0x6f] sm:$0x2]   ;;  %v438_v58 = vsel %vm331_vm2, %v436_v35, %v434_v52  ;;  %v984_v4 = vld [vmem:[%s1380_s0 + $0x5a] sm:$0x3]  ;;  %v418_v6 = vsel %vm347_vm6, %v416_v50, %v414_v60  ;;  %v992_v8 = vld [vmem:[%s1380_s0 + $0x4a] sm:$0x3] }
  0x17   :  { %v378_v51 = vsel %vm343_vm5, %v376_v30, %v374_v44  ;;  %v468_v56 = vld [vmem:[#allocation1 + $0xae] sm:$0x4]   ;;  %v466_v61 = vsel %vm323_vm0, %v464_v55, %v462_v54  ;;  %v442_v0 = vsel %vm335_vm3, %v440_v36, %v438_v58  ;;  %98 = vst [vmem:[#allocation1 + $0x168] sm:$0x3] %v984_v4  ;;  %v1000_v9 = vld [vmem:[%s1380_s0 + $0x3a] sm:$0x3] }
  0x18   :  { %v382_v57 = vsel %vm347_vm6, %v380_v34, %v378_v51  ;;  %v472_v62 = vld [vmem:[#allocation1 + $0xed] sm:$0x8]   ;;  %v470_v1 = vsel %vm327_vm1, %v468_v56, %v466_v61  ;;  %v446_v5 = vsel %vm339_vm4, %v444_v42, %v442_v0  ;;  %v1008_v10 = vld [vmem:[%s1380_s0 + $0x2a] sm:$0x3]  ;;  %138 = vst [vmem:[#allocation1 + $0x128] sm:$0x3] %v992_v8 }
  0x19   :  { %v476_v63 = vld [vmem:[#allocation1 + $0x12c] sm:$0x10]   ;;  %383 = vrot.lane.b32.xlu0 %v382_v57, %s1045_s13  ;;  %v474_v7 = vsel %vm331_vm2, %v472_v62, %v470_v1  ;;  %v450_v11 = vsel %vm343_vm5, %v448_v46, %v446_v5  ;;  %178 = vst [vmem:[#allocation1 + $0xe8] sm:$0x3] %v1000_v9  ;;  %218 = vst [vmem:[#allocation1 + $0xa8] sm:$0x3] %v1008_v10 }
  0x1a   :  { %v480_v2 = vld [vmem:[#allocation1 + $0x16b] sm:$0x20]   ;;  %v478_v12 = vsel %vm335_vm3, %v476_v63, %v474_v7  ;;  %v1016_v14 = vld [vmem:[%s1380_s0 + $0x1a] sm:$0x3]  ;;  %v1024_v15 = vld [vmem:[%s1380_s0 + $0xa] sm:$0x3]  ;;  %v454_v16 = vsel %vm347_vm6, %v452_v59, %v450_v11 }
  0x1b   :  { %v484_v3 = vld [vmem:[#allocation1 + $0x1aa] sm:$0x40]   ;;  %v482_v17 = vsel %vm339_vm4, %v480_v2, %v478_v12  ;;  %258 = vst [vmem:[#allocation1 + $0x68] sm:$0x3] %v1016_v14  ;;  %298 = vst [vmem:[#allocation1 + $0x28] sm:$0x3] %v1024_v15  ;;  %455 = vrot.lane.b32.xlu1 %v454_v16, %s1046_s26 }
  0x1c   :  { %v488_v13 = vld [vmem:[#allocation1 + $0x1e9] sm:$0x80]   ;;  %v486_v18 = vsel %vm343_vm5, %v484_v3, %v482_v17  ;;  %v969_v19 = vld [vmem:[%s1380_s0 + $0x78] sm:$0x3]  ;;  %v977_v20 = vld [vmem:[%s1380_s0 + $0x68] sm:$0x3] }
  0x1d   :  { %419 = vrot.lane.b32.xlu0 %v418_v6, %s1047_s27  ;;  %v490_v21 = vsel %vm347_vm6, %v488_v13, %v486_v18  ;;  %23 = vst [vmem:[#allocation1 + $0x1e0] sm:$0x3] %v969_v19  ;;  %63 = vst [vmem:[#allocation1 + $0x1a0] sm:$0x3] %v977_v20  ;;  %v985_v22 = vld [vmem:[%s1380_s0 + $0x58] sm:$0x3] }
  0x1e   :  { %v993_v23 = vld [vmem:[%s1380_s0 + $0x48] sm:$0x3]  ;;  %v1001_v24 = vld [vmem:[%s1380_s0 + $0x38] sm:$0x3]  ;;  %103 = vst [vmem:[#allocation1 + $0x160] sm:$0x3] %v985_v22 }
  0x1f   :  { %143 = vst [vmem:[#allocation1 + $0x120] sm:$0x3] %v993_v23  ;;  %183 = vst [vmem:[#allocation1 + $0xe0] sm:$0x3] %v1001_v24  ;;  %v1009_v25 = vld [vmem:[%s1380_s0 + $0x28] sm:$0x3] }
  0x20   :  { %v1017_v26 = vld [vmem:[%s1380_s0 + $0x18] sm:$0x3]  ;;  %v1025_v27 = vld [vmem:[%s1380_s0 + $0x8] sm:$0x3]  ;;  %223 = vst [vmem:[#allocation1 + $0xa0] sm:$0x3] %v1009_v25 }
  0x21   :  { %263 = vst [vmem:[#allocation1 + $0x60] sm:$0x3] %v1017_v26  ;;  %303 = vst [vmem:[#allocation1 + $0x20] sm:$0x3] %v1025_v27  ;;  %v970_v28 = vld [vmem:[%s1380_s0 + $0x76] sm:$0x3] }
  0x22   :  { %v978_v29 = vld [vmem:[%s1380_s0 + $0x66] sm:$0x3]  ;;  %s1048_s19 = smov 96   ;;  %28 = vst [vmem:[#allocation1 + $0x1d8] sm:$0x3] %v970_v28  ;;  %s1049_s24 = smov 88  }
  0x23   :  { %491 = vrot.lane.b32.xlu1 %v490_v21, %s1048_s19  ;;  %68 = vst [vmem:[#allocation1 + $0x198] sm:$0x3] %v978_v29  ;;  %v986_v30 = vld [vmem:[%s1380_s0 + $0x56] sm:$0x3]  ;;  %v504_v31 = vld [vmem:[#allocation1 + $0xa7] sm:$0x4]  }
  0x24   :  { %v508_v32 = vld [vmem:[#allocation1 + $0xe6] sm:$0x8]   ;;  %108 = vst [vmem:[#allocation1 + $0x158] sm:$0x3] %v986_v30  ;;  %v534_v36 = vld [vmem:[#allocation1 + $0x28] sm:$0x1]  }
  0x25   :  { %v512_v33 = vld [vmem:[#allocation1 + $0x125] sm:$0x10]   ;;  %v536_v39 = vld [vmem:[#allocation1 + $0x67] sm:$0x2]   ;;  %v592_v62 = vld [vmem:[#allocation1 + $0x19b] sm:$0x40]  }
  0x26   :  { %v498_v34 = vld [vmem:[#allocation1 + $0x29] sm:$0x1]   ;;  %v540_v40 = vld [vmem:[#allocation1 + $0xa6] sm:$0x4]   ;;  %v538_v45 = vsel %vm323_vm0, %v536_v39, %v534_v36  ;;  %v580_v52 = vld [vmem:[#allocation1 + $0xde] sm:$0x8]  }
  0x27   :  { %v500_v35 = vld [vmem:[#allocation1 + $0x68] sm:$0x2]   ;;  %v544_v41 = vld [vmem:[#allocation1 + $0xe5] sm:$0x8]   ;;  %v542_v49 = vsel %vm327_vm1, %v540_v40, %v538_v45  ;;  %v584_v53 = vld [vmem:[#allocation1 + $0x11d] sm:$0x10]  }
  0x28   :  { %v502_v37 = vsel %vm323_vm0, %v500_v35, %v498_v34  ;;  %v520_v38 = vld [vmem:[#allocation1 + $0x1a3] sm:$0x40]   ;;  %v548_v46 = vld [vmem:[#allocation1 + $0x124] sm:$0x10]   ;;  %v546_v55 = vsel %vm331_vm2, %v544_v41, %v542_v49  ;;  %v570_v56 = vld [vmem:[#allocation1 + $0x21] sm:$0x1]  }
  0x29   :  { %v506_v42 = vsel %vm327_vm1, %v504_v31, %v502_v37  ;;  %v516_v43 = vld [vmem:[#allocation1 + $0x164] sm:$0x20]   ;;  %v556_v47 = vld [vmem:[#allocation1 + $0x1a2] sm:$0x40]   ;;  %v572_v57 = vld [vmem:[#allocation1 + $0x60] sm:$0x2]   ;;  %v550_v60 = vsel %vm335_vm3, %v548_v46, %v546_v55 }
  0x2a   :  { %v524_v44 = vld [vmem:[#allocation1 + $0x1e2] sm:$0x80]   ;;  %v510_v48 = vsel %vm331_vm2, %v508_v32, %v506_v42  ;;  %v552_v50 = vld [vmem:[#allocation1 + $0x163] sm:$0x20]   ;;  %v576_v58 = vld [vmem:[#allocation1 + $0x9f] sm:$0x4]   ;;  %v574_v61 = vsel %vm323_vm0, %v572_v57, %v570_v56 }
  0x2b   :  { %v560_v51 = vld [vmem:[#allocation1 + $0x1e1] sm:$0x80]   ;;  %v514_v54 = vsel %vm335_vm3, %v512_v33, %v510_v48  ;;  %v606_v63 = vld [vmem:[#allocation1 + $0x20] sm:$0x1]   ;;  %v554_v3 = vsel %vm339_vm4, %v552_v50, %v550_v60  ;;  %v578_v4 = vsel %vm327_vm1, %v576_v58, %v574_v61  ;;  %v588_v5 = vld [vmem:[#allocation1 + $0x15c] sm:$0x20]  }
  0x2c   :  { %v518_v59 = vsel %vm339_vm4, %v516_v43, %v514_v54  ;;  %v608_v0 = vld [vmem:[#allocation1 + $0x5f] sm:$0x2]   ;;  %v596_v6 = vld [vmem:[#allocation1 + $0x1da] sm:$0x80]   ;;  %v558_v11 = vsel %vm343_vm5, %v556_v47, %v554_v3  ;;  %v582_v12 = vsel %vm331_vm2, %v580_v52, %v578_v4  ;;  %v994_v16 = vld [vmem:[%s1380_s0 + $0x46] sm:$0x3] }
  0x2d   :  { %v612_v1 = vld [vmem:[#allocation1 + $0x9e] sm:$0x4]   ;;  %v522_v2 = vsel %vm343_vm5, %v520_v38, %v518_v59  ;;  %v610_v7 = vsel %vm323_vm0, %v608_v0, %v606_v63  ;;  %v562_v17 = vsel %vm347_vm6, %v560_v51, %v558_v11  ;;  %v586_v18 = vsel %vm335_vm3, %v584_v53, %v582_v12  ;;  %148 = vst [vmem:[#allocation1 + $0x118] sm:$0x3] %v994_v16  ;;  %v1002_v20 = vld [vmem:[%s1380_s0 + $0x36] sm:$0x3] }
  0x2e   :  { %v616_v8 = vld [vmem:[#allocation1 + $0xdd] sm:$0x8]   ;;  %v526_v10 = vsel %vm347_vm6, %v524_v44, %v522_v2  ;;  %v614_v13 = vsel %vm327_vm1, %v612_v1, %v610_v7  ;;  %v1010_v21 = vld [vmem:[%s1380_s0 + $0x26] sm:$0x3]  ;;  %v1018_v22 = vld [vmem:[%s1380_s0 + $0x16] sm:$0x3]  ;;  %v590_v23 = vsel %vm339_vm4, %v588_v5, %v586_v18 }
  0x2f   :  { %v620_v9 = vld [vmem:[#allocation1 + $0x11c] sm:$0x10]   ;;  %527 = vrot.lane.b32.xlu0 %v526_v10, %s1049_s24  ;;  %v618_v19 = vsel %vm331_vm2, %v616_v8, %v614_v13  ;;  %s1050_s2 = smov 80   ;;  %188 = vst [vmem:[#allocation1 + $0xd8] sm:$0x3] %v1002_v20  ;;  %v594_v27 = vsel %vm343_vm5, %v592_v62, %v590_v23  ;;  %s1051_s7 = smov 72  }
  0x30   :  { %v624_v14 = vld [vmem:[#allocation1 + $0x15b] sm:$0x20]   ;;  %563 = vrot.lane.b32.xlu1 %v562_v17, %s1050_s2  ;;  %v622_v24 = vsel %vm335_vm3, %v620_v9, %v618_v19  ;;  %228 = vst [vmem:[#allocation1 + $0x98] sm:$0x3] %v1010_v21  ;;  %268 = vst [vmem:[#allocation1 + $0x58] sm:$0x3] %v1018_v22  ;;  %v598_v29 = vsel %vm347_vm6, %v596_v6, %v594_v27 }
  0x31   :  { %v628_v15 = vld [vmem:[#allocation1 + $0x19a] sm:$0x40]   ;;  %v1026_v26 = vld [vmem:[%s1380_s0 + $0x6] sm:$0x3]  ;;  %v626_v28 = vsel %vm339_vm4, %v624_v14, %v622_v24  ;;  %v971_v31 = vld [vmem:[%s1380_s0 + $0x74] sm:$0x3] }
  0x32   :  { %v632_v25 = vld [vmem:[#allocation1 + $0x1d9] sm:$0x80]   ;;  %308 = vst [vmem:[#allocation1 + $0x18] sm:$0x3] %v1026_v26  ;;  %v630_v30 = vsel %vm343_vm5, %v628_v15, %v626_v28  ;;  %33 = vst [vmem:[#allocation1 + $0x1d0] sm:$0x3] %v971_v31 }
  0x33   :  { %599 = vrot.lane.b32.xlu0 %v598_v29, %s1051_s7  ;;  %v634_v32 = vsel %vm347_vm6, %v632_v25, %v630_v30  ;;  %v979_v33 = vld [vmem:[%s1380_s0 + $0x64] sm:$0x3]  ;;  %v987_v34 = vld [vmem:[%s1380_s0 + $0x54] sm:$0x3]  ;;  %s1052_s14 = smov 64   ;;  %s1053_s4 = smov 56  }
  0x34   :  { %v995_v35 = vld [vmem:[%s1380_s0 + $0x44] sm:$0x3]  ;;  %635 = vrot.lane.b32.xlu1 %v634_v32, %s1052_s14  ;;  %73 = vst [vmem:[#allocation1 + $0x190] sm:$0x3] %v979_v33  ;;  %113 = vst [vmem:[#allocation1 + $0x150] sm:$0x3] %v987_v34 }
  0x35   :  { %153 = vst [vmem:[#allocation1 + $0x110] sm:$0x3] %v995_v35  ;;  %v1003_v36 = vld [vmem:[%s1380_s0 + $0x34] sm:$0x3]  ;;  %v1011_v37 = vld [vmem:[%s1380_s0 + $0x24] sm:$0x3] }
  0x36   :  { %v1019_v38 = vld [vmem:[%s1380_s0 + $0x14] sm:$0x3]  ;;  %193 = vst [vmem:[#allocation1 + $0xd0] sm:$0x3] %v1003_v36  ;;  %233 = vst [vmem:[#allocation1 + $0x90] sm:$0x3] %v1011_v37 }
  0x37   :  { %273 = vst [vmem:[#allocation1 + $0x50] sm:$0x3] %v1019_v38  ;;  %v1027_v39 = vld [vmem:[%s1380_s0 + $0x4] sm:$0x3]  ;;  %v972_v40 = vld [vmem:[%s1380_s0 + $0x72] sm:$0x3] }
  0x38   :  { %313 = vst [vmem:[#allocation1 + $0x10] sm:$0x3] %v1027_v39  ;;  %38 = vst [vmem:[#allocation1 + $0x1c8] sm:$0x3] %v972_v40  ;;  %v980_v41 = vld [vmem:[%s1380_s0 + $0x62] sm:$0x3] }
  0x39   :  { %v644_v42 = vld [vmem:[#allocation1 + $0x58] sm:$0x2]   ;;  %v692_v46 = vld [vmem:[#allocation1 + $0x114] sm:$0x10]   ;;  %78 = vst [vmem:[#allocation1 + $0x188] sm:$0x3] %v980_v41 }
  0x3a   :  { %v648_v43 = vld [vmem:[#allocation1 + $0x97] sm:$0x4]   ;;  %v678_v49 = vld [vmem:[#allocation1 + $0x18] sm:$0x1]   ;;  %v988_v56 = vld [vmem:[%s1380_s0 + $0x52] sm:$0x3] }
  0x3b   :  { %v652_v44 = vld [vmem:[#allocation1 + $0xd6] sm:$0x8]   ;;  %v680_v50 = vld [vmem:[#allocation1 + $0x57] sm:$0x2]   ;;  %118 = vst [vmem:[#allocation1 + $0x148] sm:$0x3] %v988_v56 }
  0x3c   :  { %v656_v45 = vld [vmem:[#allocation1 + $0x115] sm:$0x10]   ;;  %v682_v53 = vsel %vm323_vm0, %v680_v50, %v678_v49  ;;  %v684_v54 = vld [vmem:[#allocation1 + $0x96] sm:$0x4]   ;;  %v996_v61 = vld [vmem:[%s1380_s0 + $0x42] sm:$0x3] }
  0x3d   :  { %v642_v47 = vld [vmem:[#allocation1 + $0x19] sm:$0x1]   ;;  %v688_v55 = vld [vmem:[#allocation1 + $0xd5] sm:$0x8]   ;;  %v686_v59 = vsel %vm327_vm1, %v684_v54, %v682_v53  ;;  %158 = vst [vmem:[#allocation1 + $0x108] sm:$0x3] %v996_v61 }
  0x3e   :  { %v660_v48 = vld [vmem:[#allocation1 + $0x154] sm:$0x20]   ;;  %v646_v51 = vsel %vm323_vm0, %v644_v42, %v642_v47  ;;  %v696_v60 = vld [vmem:[#allocation1 + $0x153] sm:$0x20]   ;;  %v690_v63 = vsel %vm331_vm2, %v688_v55, %v686_v59  ;;  %v716_v4 = vld [vmem:[#allocation1 + $0x50] sm:$0x2]  }
  0x3f   :  { %v664_v52 = vld [vmem:[#allocation1 + $0x193] sm:$0x40]   ;;  %v650_v57 = vsel %vm327_vm1, %v648_v43, %v646_v51  ;;  %v700_v0 = vld [vmem:[#allocation1 + $0x192] sm:$0x40]   ;;  %v694_v3 = vsel %vm335_vm3, %v692_v46, %v690_v63  ;;  %v720_v5 = vld [vmem:[#allocation1 + $0x8f] sm:$0x4]  }
  0x40   :  { %v668_v58 = vld [vmem:[#allocation1 + $0x1d2] sm:$0x80]   ;;  %v654_v62 = vsel %vm331_vm2, %v652_v44, %v650_v57  ;;  %v704_v1 = vld [vmem:[#allocation1 + $0x1d1] sm:$0x80]   ;;  %v724_v6 = vld [vmem:[#allocation1 + $0xce] sm:$0x8]   ;;  %v698_v9 = vsel %vm339_vm4, %v696_v60, %v694_v3 }
  0x41   :  { %v658_v2 = vsel %vm335_vm3, %v656_v45, %v654_v62  ;;  %v728_v7 = vld [vmem:[#allocation1 + $0x10d] sm:$0x10]   ;;  %v750_v12 = vld [vmem:[#allocation1 + $0x10] sm:$0x1]   ;;  %v702_v15 = vsel %vm343_vm5, %v700_v0, %v698_v9  ;;  %v1004_v27 = vld [vmem:[%s1380_s0 + $0x32] sm:$0x3] }
  0x42   :  { %v662_v8 = vsel %vm339_vm4, %v660_v48, %v658_v2  ;;  %v714_v10 = vld [vmem:[#allocation1 + $0x11] sm:$0x1]   ;;  %v752_v13 = vld [vmem:[#allocation1 + $0x4f] sm:$0x2]   ;;  %v706_v22 = vsel %vm347_vm6, %v704_v1, %v702_v15  ;;  %s1054_s5 = smov 48   ;;  %s1055_s18 = smov 40  }
  0x43   :  { %v732_v11 = vld [vmem:[#allocation1 + $0x14c] sm:$0x20]   ;;  %v666_v14 = vsel %vm343_vm5, %v664_v52, %v662_v8  ;;  %v718_v16 = vsel %vm323_vm0, %v716_v4, %v714_v10  ;;  %v754_v17 = vsel %vm323_vm0, %v752_v13, %v750_v12  ;;  %v756_v18 = vld [vmem:[#allocation1 + $0x8e] sm:$0x4]   ;;  %707 = vrot.lane.b32.xlu1 %v706_v22, %s1054_s5  ;;  %198 = vst [vmem:[#allocation1 + $0xc8] sm:$0x3] %v1004_v27 }
  0x44   :  { %v760_v19 = vld [vmem:[#allocation1 + $0xcd] sm:$0x8]   ;;  %v670_v21 = vsel %vm347_vm6, %v668_v58, %v666_v14  ;;  %v722_v23 = vsel %vm327_vm1, %v720_v5, %v718_v16  ;;  %v736_v24 = vld [vmem:[#allocation1 + $0x18b] sm:$0x40]   ;;  %v758_v25 = vsel %vm327_vm1, %v756_v18, %v754_v17  ;;  %v1012_v31 = vld [vmem:[%s1380_s0 + $0x22] sm:$0x3] }
  0x45   :  { %v764_v20 = vld [vmem:[#allocation1 + $0x10c] sm:$0x10]   ;;  %671 = vrot.lane.b32.xlu0 %v670_v21, %s1053_s4  ;;  %v726_v28 = vsel %vm331_vm2, %v724_v6, %v722_v23  ;;  %v762_v29 = vsel %vm331_vm2, %v760_v19, %v758_v25  ;;  %v1020_v32 = vld [vmem:[%s1380_s0 + $0x12] sm:$0x3]  ;;  %v740_v34 = vld [vmem:[#allocation1 + $0x1ca] sm:$0x80]  }
  0x46   :  { %v768_v26 = vld [vmem:[#allocation1 + $0x14b] sm:$0x20]   ;;  %v730_v33 = vsel %vm335_vm3, %v728_v7, %v726_v28  ;;  %v766_v35 = vsel %vm335_vm3, %v764_v20, %v762_v29  ;;  %238 = vst [vmem:[#allocation1 + $0x88] sm:$0x3] %v1012_v31  ;;  %278 = vst [vmem:[#allocation1 + $0x48] sm:$0x3] %v1020_v32 }
  0x47   :  { %v772_v30 = vld [vmem:[#allocation1 + $0x18a] sm:$0x40]   ;;  %v1028_v37 = vld [vmem:[%s1380_s0 + $0x2] sm:$0x3]  ;;  %v734_v38 = vsel %vm339_vm4, %v732_v11, %v730_v33  ;;  %v770_v39 = vsel %vm339_vm4, %v768_v26, %v766_v35  ;;  %v973_v44 = vld [vmem:[%s1380_s0 + $0x70] sm:$0x3] }
  0x48   :  { %v776_v36 = vld [vmem:[#allocation1 + $0x1c9] sm:$0x80]   ;;  %317 = vst [vmem:[#allocation1 + $0x8] sm:$0x3] %v1028_v37  ;;  %v738_v40 = vsel %vm343_vm5, %v736_v24, %v734_v38  ;;  %v774_v41 = vsel %vm343_vm5, %v772_v30, %v770_v39  ;;  %v989_v46 = vld [vmem:[%s1380_s0 + $0x50] sm:$0x3] }
  0x49   :  { %v742_v42 = vsel %vm347_vm6, %v740_v34, %v738_v40  ;;  %v778_v43 = vsel %vm347_vm6, %v776_v36, %v774_v41  ;;  %v981_v45 = vld [vmem:[%s1380_s0 + $0x60] sm:$0x3]  ;;  %s1056_s19 = smov 32   ;;  %43 = vst [vmem:[#allocation1 + $0x1c0] sm:$0x3] %v973_v44  ;;  %s1058_s30 = smov 16  }
  0x4a   :  { %743 = vrot.lane.b32.xlu0 %v742_v42, %s1055_s18  ;;  %779 = vrot.lane.b32.xlu1 %v778_v43, %s1056_s19  ;;  %83 = vst [vmem:[#allocation1 + $0x180] sm:$0x3] %v981_v45  ;;  %123 = vst [vmem:[#allocation1 + $0x140] sm:$0x3] %v989_v46  ;;  %v997_v47 = vld [vmem:[%s1380_s0 + $0x40] sm:$0x3] }
  0x4b   :  { %v1005_v48 = vld [vmem:[%s1380_s0 + $0x30] sm:$0x3]  ;;  %163 = vst [vmem:[#allocation1 + $0x100] sm:$0x3] %v997_v47  ;;  %v1013_v49 = vld [vmem:[%s1380_s0 + $0x20] sm:$0x3] }
  0x4c   :  { %203 = vst [vmem:[#allocation1 + $0xc0] sm:$0x3] %v1005_v48  ;;  %v1021_v50 = vld [vmem:[%s1380_s0 + $0x10] sm:$0x3]  ;;  %v318_v51 = vld [vmem:[%s1380_s0] sm:$0x3] }
  0x4d   :  { %v796_v52 = vld [vmem:[#allocation1 + $0xc6] sm:$0x8]   ;;  %v832_v53 = vld [vmem:[#allocation1 + $0xc5] sm:$0x8]   ;;  %243 = vst [vmem:[#allocation1 + $0x80] sm:$0x3] %v1013_v49 }
  0x4e   :  { %283 = vst [vmem:[#allocation1 + $0x40] sm:$0x3] %v1021_v50  ;;  %319 = vst [vmem:[#allocation1] sm:$0x3] %v318_v51  ;;  %v788_v54 = vld [vmem:[#allocation1 + $0x48] sm:$0x2]  }
  0x4f   :  { %v792_v55 = vld [vmem:[#allocation1 + $0x87] sm:$0x4]   ;;  %v824_v56 = vld [vmem:[#allocation1 + $0x47] sm:$0x2]   ;;  %s1057_s0 = smov 24   ;;  %vm349_vm7 = vcmask 64512  }
  0x50   :  { %v786_v57 = vld [vmem:[#allocation1 + $0x9] sm:$0x1]   ;;  %v822_v58 = vld [vmem:[#allocation1 + $0x8] sm:$0x1]   ;;  %v884_v37 = vld [vmem:[#allocation1 + $0x1ba] sm:$0x80]  }
  0x51   :  { %v828_v59 = vld [vmem:[#allocation1 + $0x86] sm:$0x4]   ;;  %v790_v60 = vsel %vm323_vm0, %v788_v54, %v786_v57  ;;  %v800_v61 = vld [vmem:[#allocation1 + $0x105] sm:$0x10]   ;;  %v826_v63 = vsel %vm323_vm0, %v824_v56, %v822_v58  ;;  %v876_v29 = vld [vmem:[#allocation1 + $0x13c] sm:$0x20]  }
  0x52   :  { %v808_v62 = vld [vmem:[#allocation1 + $0x183] sm:$0x40]   ;;  %v836_v0 = vld [vmem:[#allocation1 + $0x104] sm:$0x10]   ;;  %v794_v1 = vsel %vm327_vm1, %v792_v55, %v790_v60  ;;  %v830_v4 = vsel %vm327_vm1, %v828_v59, %v826_v63  ;;  %v872_v13 = vld [vmem:[#allocation1 + $0xfd] sm:$0x10]  }
  0x53   :  { %v804_v2 = vld [vmem:[#allocation1 + $0x144] sm:$0x20]   ;;  %v840_v5 = vld [vmem:[#allocation1 + $0x143] sm:$0x20]   ;;  %v798_v6 = vsel %vm331_vm2, %v796_v52, %v794_v1  ;;  %v834_v7 = vsel %vm331_vm2, %v832_v53, %v830_v4  ;;  %v868_v12 = vld [vmem:[#allocation1 + $0xbe] sm:$0x8]  }
  0x54   :  { %v812_v3 = vld [vmem:[#allocation1 + $0x1c2] sm:$0x80]   ;;  %v844_v8 = vld [vmem:[#allocation1 + $0x182] sm:$0x40]   ;;  %v802_v10 = vsel %vm335_vm3, %v800_v61, %v798_v6  ;;  %v838_v11 = vsel %vm335_vm3, %v836_v0, %v834_v7  ;;  %v330_v14 = vld [vmem:[#allocation1 + $0xbd] sm:$0x8]  }
  0x55   :  { %v848_v9 = vld [vmem:[#allocation1 + $0x1c1] sm:$0x80]   ;;  %v806_v15 = vsel %vm339_vm4, %v804_v2, %v802_v10  ;;  %v842_v16 = vsel %vm339_vm4, %v840_v5, %v838_v11  ;;  %v858_v17 = vld [vmem:[#allocation1 + $0x1] sm:$0x1]   ;;  %v320_v23 = vld [vmem:[#allocation1] sm:$0x1]  }
  0x56   :  { %v860_v18 = vld [vmem:[#allocation1 + $0x40] sm:$0x2]   ;;  %v810_v20 = vsel %vm343_vm5, %v808_v62, %v806_v15  ;;  %v846_v21 = vsel %vm343_vm5, %v844_v8, %v842_v16  ;;  %v322_v24 = vld [vmem:[#allocation1 + $0x3f] sm:$0x2]   ;;  %s1059_s2 = smov 8   ;;  %vm385_vm8 = vcmask 1048512  }
  0x57   :  { %v864_v19 = vld [vmem:[#allocation1 + $0x7f] sm:$0x4]   ;;  %v862_v22 = vsel %vm323_vm0, %v860_v18, %v858_v17  ;;  %v326_v25 = vld [vmem:[#allocation1 + $0x7e] sm:$0x4]   ;;  %v814_v26 = vsel %vm347_vm6, %v812_v3, %v810_v20  ;;  %v850_v27 = vsel %vm347_vm6, %v848_v9, %v846_v21  ;;  %v324_v30 = vsel %vm323_vm0, %v322_v24, %v320_v23 }
  0x58   :  { %v866_v28 = vsel %vm327_vm1, %v864_v19, %v862_v22  ;;  %v334_v31 = vld [vmem:[#allocation1 + $0xfc] sm:$0x10]   ;;  %815 = vrot.lane.b32.xlu0 %v814_v26, %s1057_s0  ;;  %851 = vrot.lane.b32.xlu1 %v850_v27, %s1058_s30  ;;  %v880_v33 = vld [vmem:[#allocation1 + $0x17b] sm:$0x40]   ;;  %v328_v34 = vsel %vm327_vm1, %v326_v25, %v324_v30  ;;  %vm421_vm9 = vcmask 982912   ;;  %vm457_vm10 = vcmask 917312  }
  0x59   :  { %v870_v32 = vsel %vm331_vm2, %v868_v12, %v866_v28  ;;  %v338_v35 = vld [vmem:[#allocation1 + $0x13b] sm:$0x20]   ;;  %v332_v38 = vsel %vm331_vm2, %v330_v14, %v328_v34  ;;  %vm493_vm11 = vcmask 851712   ;;  %vm529_vm12 = vcmask 786112  }
  0x5a   :  { %v874_v36 = vsel %vm335_vm3, %v872_v13, %v870_v32  ;;  %v342_v39 = vld [vmem:[#allocation1 + $0x17a] sm:$0x40]   ;;  %v336_v41 = vsel %vm335_vm3, %v334_v31, %v332_v38  ;;  %vm565_vm13 = vcmask 720512   ;;  %vm601_vm14 = vcmask 654912  }
  0x5b   :  { %v878_v40 = vsel %vm339_vm4, %v876_v29, %v874_v36  ;;  %v346_v42 = vld [vmem:[#allocation1 + $0x1b9] sm:$0x80]   ;;  %v340_v44 = vsel %vm339_vm4, %v338_v35, %v336_v41  ;;  %vm637_vm15 = vcmask 589312   ;;  %vm673_vm0 = vcmask 523712  }
  0x5c   :  { %v882_v43 = vsel %vm343_vm5, %v880_v33, %v878_v40  ;;  %v344_v46 = vsel %vm343_vm5, %v342_v39, %v340_v44  ;;  %vm709_vm1 = vcmask 458112   ;;  %vm745_vm2 = vcmask 392512  }
  0x5d   :  { %v886_v45 = vsel %vm347_vm6, %v884_v37, %v882_v43  ;;  %v348_v47 = vsel %vm347_vm6, %v346_v42, %v344_v46  ;;  %vm781_vm3 = vcmask 326912   ;;  %vm817_vm4 = vcmask 261312  }
  0x5e   :  { %887 = vrot.lane.b32.xlu0 %v886_v45, %s1059_s2  ;;  %350 = vst.msk [vmem:[#allocation0] sm:$0xf] %vm349_vm7, %v348_v47   ;;  %352 = vst.msk [vmem:[#allocation0 + $0x4] sm:$0xf0] %vm349_vm7, %v348_v47   ;;  %vm853_vm5 = vcmask 195712   ;;  %vm889_vm6 = vcmask 130112  }
  0x8b   :  { %v384_v48 = vpop.permute.xlu0 %383  }
  0x8c   :  { %386 = vst.msk [vmem:[#allocation0] sm:$0xf] %vm385_vm8, %v384_v48   ;;  %388 = vst.msk [vmem:[#allocation0 + $0x4] sm:$0xf0] %vm385_vm8, %v384_v48  }
  0x8d   :  { %v456_v49 = vpop.permute.xlu1 %455  }
  0x8f   :  { %v420_v50 = vpop.permute.xlu0 %419  }
  0x90   :  { %422 = vst.msk [vmem:[#allocation0] sm:$0xf] %vm421_vm9, %v420_v50   ;;  %424 = vst.msk [vmem:[#allocation0 + $0x4] sm:$0xf0] %vm421_vm9, %v420_v50  }
  0x91   :  { %458 = vst.msk [vmem:[#allocation0] sm:$0xf] %vm457_vm10, %v456_v49   ;;  %460 = vst.msk [vmem:[#allocation0 + $0x4] sm:$0xf0] %vm457_vm10, %v456_v49  }
  0x95   :  { %v492_v51 = vpop.permute.xlu1 %491  }
  0x96   :  { %494 = vst.msk [vmem:[#allocation0] sm:$0xf] %vm493_vm11, %v492_v51   ;;  %496 = vst.msk [vmem:[#allocation0 + $0x4] sm:$0xf0] %vm493_vm11, %v492_v51  }
  0xa1   :  { %v528_v52 = vpop.permute.xlu0 %527  }
  0xa2   :  { %530 = vst.msk [vmem:[#allocation0] sm:$0xf] %vm529_vm12, %v528_v52   ;;  %532 = vst.msk [vmem:[#allocation0 + $0x4] sm:$0xf0] %vm529_vm12, %v528_v52   ;;  %v564_v53 = vpop.permute.xlu1 %563  }
  0xa3   :  { %566 = vst.msk [vmem:[#allocation0] sm:$0xf] %vm565_vm13, %v564_v53   ;;  %568 = vst.msk [vmem:[#allocation0 + $0x4] sm:$0xf0] %vm565_vm13, %v564_v53  }
  0xa5   :  { %v600_v54 = vpop.permute.xlu0 %599  }
  0xa6   :  { %602 = vst.msk [vmem:[#allocation0] sm:$0xf] %vm601_vm14, %v600_v54   ;;  %604 = vst.msk [vmem:[#allocation0 + $0x4] sm:$0xf0] %vm601_vm14, %v600_v54   ;;  %v636_v55 = vpop.permute.xlu1 %635  }
  0xa7   :  { %638 = vst.msk [vmem:[#allocation0] sm:$0xf] %vm637_vm15, %v636_v55   ;;  %640 = vst.msk [vmem:[#allocation0 + $0x4] sm:$0xf0] %vm637_vm15, %v636_v55  }
  0xb5   :  { %v708_v57 = vpop.permute.xlu1 %707  }
  0xb7   :  { %v672_v56 = vpop.permute.xlu0 %671  }
  0xb8   :  { %674 = vst.msk [vmem:[#allocation0] sm:$0xf] %vm673_vm0, %v672_v56   ;;  %676 = vst.msk [vmem:[#allocation0 + $0x4] sm:$0xf0] %vm673_vm0, %v672_v56  }
  0xb9   :  { %710 = vst.msk [vmem:[#allocation0] sm:$0xf] %vm709_vm1, %v708_v57   ;;  %712 = vst.msk [vmem:[#allocation0 + $0x4] sm:$0xf0] %vm709_vm1, %v708_v57  }
  0xbc   :  { %v744_v58 = vpop.permute.xlu0 %743   ;;  %v780_v59 = vpop.permute.xlu1 %779  }
  0xbd   :  { %746 = vst.msk [vmem:[#allocation0] sm:$0xf] %vm745_vm2, %v744_v58   ;;  %748 = vst.msk [vmem:[#allocation0 + $0x4] sm:$0xf0] %vm745_vm2, %v744_v58  }
  0xbe   :  { %782 = vst.msk [vmem:[#allocation0] sm:$0xf] %vm781_vm3, %v780_v59   ;;  %784 = vst.msk [vmem:[#allocation0 + $0x4] sm:$0xf0] %vm781_vm3, %v780_v59  }
  0xca   :  { %v816_v60 = vpop.permute.xlu0 %815   ;;  %v852_v61 = vpop.permute.xlu1 %851  }
  0xcb   :  { %818 = vst.msk [vmem:[#allocation0] sm:$0xf] %vm817_vm4, %v816_v60   ;;  %820 = vst.msk [vmem:[#allocation0 + $0x4] sm:$0xf0] %vm817_vm4, %v816_v60  }
  0xcc   :  { %854 = vst.msk [vmem:[#allocation0] sm:$0xf] %vm853_vm5, %v852_v61   ;;  %856 = vst.msk [vmem:[#allocation0 + $0x4] sm:$0xf0] %vm853_vm5, %v852_v61  }
  0xd0   :  { %v888_v62 = vpop.permute.xlu0 %887  }
  0xd1   :  { %890 = vst.msk [vmem:[#allocation0] sm:$0xf] %vm889_vm6, %v888_v62   ;;  %892 = vst.msk [vmem:[#allocation0 + $0x4] sm:$0xf0] %vm889_vm6, %v888_v62  }
  0xd8   :  { %v896_v63 = vld [vmem:[#allocation0] sm:$0xf]  ;;  %v900_v0 = vld [vmem:[#allocation0 + $0x8] sm:$0xf] }
  0xd9   :  { %898 = vst [vmem:[%s1381_s1] sm:$0xf] %v896_v63  ;;  %1029 = vst [vmem:[%s1381_s1 + $0x4] sm:$0xf] %v900_v0 }

// kernel: _lambda_.5
= control target key start
LH: loop header
LB: loop body
LE: loop exit
PB: predicated region body
PF: predicated region fallthrough
CT: control target
= control target key end

     0   :  { %s612_s15 = smov 0   ;;  %s614_s16 = smov 0   ;;  %s659_s0 = inlined_call_operand.vmem [shape: f32[2,4,144], index: 0, kind: input, shape index: {}]   ;;  %s660_s1 = inlined_call_operand.vmem [shape: f32[2,4,144], index: 1, kind: input, shape index: {}]   ;;  %s661_s2 = inlined_call_operand.vmem [shape: f32[8,4], index: 2, kind: input, shape index: {}]   ;;  %s662_s3 = inlined_call_operand.vmem [shape: f32[8,4], index: 3, kind: input, shape index: {}]   ;;  %s663_s4 = inlined_call_operand.vmem [shape: bf16[2,8,144], index: 4, kind: output, shape index: {}]  }
   0x1   :  { %s616_s17 = smov 0  }
   0x2 LB: > { %s26_s18 = sadd.s32 1, %s580_s16  ;;  %p515_p0 = scmp.ge.s32.totalorder %s584_s17, 1  ;;  %s584_s17 = sphi %s616_s17, %s14_s17   ;;  %s580_s16 = sphi %s614_s16, %s665_s16   ;;  %s576_s15 = sphi %s612_s15, %s664_s15  }
   0x3   : > { %p28_p1 = scmp.ge.s32.totalorder %s26_s18, 2  ;;  %p200_p2 = scmp.lt.s32.totalorder %s584_s17, 3 }
   0x5   : > { %s667_s18 = smov (%p28_p1, %s26_s18), 0  ;;  %p201_p3 = pnand %p515_p0, %p200_p2 }
   0x6   : > { %p244_p4 = scmp.lt.s32.totalorder (!%p201_p3), %s576_s15, 1  ;;  %v586_v0 = vmov (!%p201_p3), 0   ;;  %vm294_vm0 = vcmask (!%p201_p3), 1041408   ;;  %v282_v7 = vld [vmem:[%s662_s3] sm:$0xff] (!%p201_p3)  ;;  %vm290_vm1 = vcmask (!%p201_p3), 31744   ;;  %vm402_vm2 = vcmask (!%p201_p3), 1043456  }
   0x7   : > { %204 = sbr.rel (%p201_p3) target bundleno = 247 (0xf7), region = 36  ;;  %333 = vmatprep.mubr.bf16.mxu1 (!%p201_p3), %v586_v0  ;;  %383 = vmatprep.mubr.bf16.mxu0 (!%p201_p3), %v586_v0  ;;  %v274_v10 = vld [vmem:[%s661_s2] sm:$0xff] (!%p201_p3)  ;;  %v283_v13 = vpack.c.bf16 (!%p201_p3), %v282_v7, %v282_v7  ;;  %vm403_vm3 = vcmask (!%p201_p3), 130052  }
   0x8   : > { %v275_v14 = vpack.c.bf16 (!%p201_p3), %v274_v10, %v274_v10  ;;  %vm404_vm4 = vmor (!%p201_p3), %vm403_vm3, %vm402_vm2 }
   0xe   : > { %s669_s15 = smov (!%p244_p4, %s576_s15), 1 }
   0xf   : > { %s630_s19 = sshll.u32 %s669_s15, 3 }
  0x10   : > { %s261_s22 = scalar_lea.vmem %s660_s1, %s630_s19  ;;  %s251_s25 = scalar_lea.vmem %s659_s0, %s630_s19 }
  0x11   : > { %v284_v1 = vld [vmem:[%s261_s22] sm:$0xff]  ;;  %s271_s6 = scalar_lea.vmem %s663_s4, %s630_s19 }
  0x12   : > { %v286_v2 = vcombine.high %v284_v1, %v284_v1  ;;  %v276_v3 = vld [vmem:[%s251_s25] sm:$0xff]  ;;  %v288_v4 = vpack.c.bf16 %v284_v1, %v284_v1 }
  0x13   : > { %v278_v5 = vcombine.high %v276_v3, %v276_v3  ;;  %v280_v6 = vpack.c.bf16 %v276_v3, %v276_v3 }
  0x14   : > { %v289_v8 = vpack.c.bf16 %v286_v2, %v286_v2  ;;  %v296_v9 = vsel %vm294_vm0, %v288_v4, 0 }
  0x15   : > { %v281_v11 = vpack.c.bf16 %v278_v5, %v278_v5  ;;  %v346_v12 = vsel %vm294_vm0, %v280_v6, 0 }
  0x16   : > { %522 = vmatprep.subr.msk.bf16.mxu1 %vm294_vm0, %v289_v8 }
  0x17   : > { %524 = vmatprep.subr.msk.bf16.mxu0 %vm294_vm0, %v281_v11  ;;  %302 = vmatpush1.bf16.msra.mxu1 %v296_v9 }
  0x18   : > { %352 = vmatpush1.bf16.msra.mxu0 %v346_v12 }
  0x1a   : > { %523 = vmatmul.mubr.msk.bf16.vlgmr.msra.gmra.mrb[0].mxu1 %vm290_vm1, %v283_v13 }
  0x1b   : > { %525 = vmatmul.mubr.msk.bf16.vlgmr.msra.gmra.mrb[0].mxu0 %vm290_vm1, %v275_v14 }
  0xed   : > { %v335_v15 = vpop.f32.mrb[0].mxu1 }
  0xee   : > { %v385_v16 = vpop.f32.mrb[0].mxu0  ;;  %v337_v17 = vpop.f32.mrb[1].mxu1 }
  0xef   : > { %v386_v18 = vadd.f32 %v385_v16, %v335_v15  ;;  %v387_v19 = vpop.f32.mrb[1].mxu0  ;;  %v339_v20 = vpop.f32.mrb[2].mxu1 }
  0xf0   : > { %v388_v21 = vadd.f32 %v387_v19, %v337_v17  ;;  %v389_v22 = vpop.f32.mrb[2].mxu0  ;;  %v340_v23 = vpop.f32.mrb[3].mxu1 }
  0xf1   : > { %v392_v24 = vmax.f32 %v386_v18, 0.0  ;;  %v390_v25 = vpop.f32.mrb[3].mxu0 }
  0xf2   : > { %v393_v26 = vmax.f32 %v388_v21, 0.0 }
  0xf4   : > { %v532_v27 = vpack.c.bf16 %v393_v26, %v392_v24 }
  0xf6   : > { %405 = vst.msk [vmem:[%s271_s6] sm:$0xff] %vm404_vm4, %v532_v27 }
  0xf7 PF: > { %s14_s17 = sadd.s32 1, %s584_s17   ;;  %s664_s15 = smov %s580_s16 }
  0xf8   : > { %p11_p5 = scmp.ge.s32.totalorder %s14_s17, 4   ;;  %s665_s16 = smov %s667_s18 }
  0xfa   :  { %13 = sbr.rel (!%p11_p5) target bundleno = 2 (0x2), region = 69 }

// kernel: reverse.0
= control target key start
LH: loop header
LB: loop body
LE: loop exit
PB: predicated region body
PF: predicated region fallthrough
CT: control target
= control target key end

     0   :  { %v71_v3 = vlaneseq  ;;  %v64_v9 = vld [vmem:[#allocation0 + $0x7] ss:$-1 sm:$0xff]  ;;  %v78_v12 = vld [vmem:[#allocation0 + $0x17] ss:$-1 sm:$0xff]  ;;  %s329_s0 = inlined_call_operand.vmem [shape: f32[2,4,16,7], index: 0, kind: input, shape index: {}]   ;;  %s330_s1 = inlined_call_operand.vmem [shape: f32[2,4,16,7], index: 1, kind: output, shape index: {}]  }
   0x1   :  { %v44_v0 = vld [vmem:[%s329_s0] sm:$0xff]  ;;  %v46_v1 = vld [vmem:[%s329_s0 + $0x8] sm:$0xff]  ;;  %v48_v2 = vld [vmem:[%s329_s0 + $0x10] sm:$0xff]  ;;  %v65_v10 = vrot.slane %v64_v9, 1  ;;  %v79_v14 = vrot.slane %v78_v12, 1 }
   0x2   :  { %45 = vst [vmem:[#allocation0 + $0x8] sm:$0xff] %v44_v0  ;;  %47 = vst [vmem:[#allocation0 + $0x18] sm:$0xff] %v46_v1  ;;  %v50_v4 = vld [vmem:[%s329_s0 + $0x18] sm:$0xff]  ;;  %v52_v5 = vld [vmem:[%s329_s0 + $0x20] sm:$0xff]  ;;  %v72_v11 = vshrl.u32 %v71_v3, 7 }
   0x3   :  { %49 = vst [vmem:[#allocation0 + $0x28] sm:$0xff] %v48_v2  ;;  %v54_v6 = vld [vmem:[%s329_s0 + $0x28] sm:$0xff]  ;;  %51 = vst [vmem:[#allocation0 + $0x38] sm:$0xff] %v50_v4  ;;  %v56_v7 = vld [vmem:[%s329_s0 + $0x30] sm:$0xff] }
   0x4   :  { %53 = vst [vmem:[#allocation0 + $0x48] sm:$0xff] %v52_v5  ;;  %55 = vst [vmem:[#allocation0 + $0x58] sm:$0xff] %v54_v6  ;;  %v58_v8 = vld [vmem:[%s329_s0 + $0x38] sm:$0xff]  ;;  %v92_v13 = vld [vmem:[#allocation0 + $0x27] ss:$-1 sm:$0xff]  ;;  %vm73_vm0 = vcmp.lt.s32.totalorder %v72_v11, 7 }
   0x5   :  { %57 = vst [vmem:[#allocation0 + $0x68] sm:$0xff] %v56_v7  ;;  %59 = vst [vmem:[#allocation0 + $0x78] sm:$0xff] %v58_v8  ;;  %v93_v15 = vrot.slane %v92_v13, 1  ;;  %v106_v16 = vld [vmem:[#allocation0 + $0x37] ss:$-1 sm:$0xff] }
   0x6   :  { %66 = vst [vmem:[#allocation1] sm:$0xff] %v65_v10  ;;  %v107_v17 = vrot.slane %v106_v16, 1  ;;  %v120_v18 = vld [vmem:[#allocation0 + $0x47] ss:$-1 sm:$0xff]  ;;  %v134_v19 = vld [vmem:[#allocation0 + $0x57] ss:$-1 sm:$0xff] }
   0x7   :  { %80 = vst [vmem:[#allocation1 + $0x8] sm:$0xff] %v79_v14  ;;  %94 = vst [vmem:[#allocation1 + $0x10] sm:$0xff] %v93_v15  ;;  %v121_v20 = vrot.slane %v120_v18, 1  ;;  %v135_v21 = vrot.slane %v134_v19, 1  ;;  %v148_v22 = vld [vmem:[#allocation0 + $0x67] ss:$-1 sm:$0xff] }
   0x8   :  { %v162_v23 = vld [vmem:[#allocation0 + $0x77] ss:$-1 sm:$0xff]  ;;  %108 = vst [vmem:[#allocation1 + $0x18] sm:$0xff] %v107_v17  ;;  %v149_v24 = vrot.slane %v148_v22, 1 }
   0x9   :  { %v163_v25 = vrot.slane %v162_v23, 1  ;;  %v69_v26 = vld [vmem:[#allocation0 + $0xf] ss:$-1 sm:$0xff]  ;;  %v83_v27 = vld [vmem:[#allocation0 + $0x1f] ss:$-1 sm:$0xff]  ;;  %122 = vst [vmem:[#allocation1 + $0x20] sm:$0xff] %v121_v20 }
   0xa   :  { %v97_v28 = vld [vmem:[#allocation0 + $0x2f] ss:$-1 sm:$0xff]  ;;  %136 = vst [vmem:[#allocation1 + $0x28] sm:$0xff] %v135_v21  ;;  %v70_v29 = vrot.slane %v69_v26, 1  ;;  %v84_v30 = vrot.slane %v83_v27, 1  ;;  %150 = vst [vmem:[#allocation1 + $0x30] sm:$0xff] %v149_v24 }
   0xb   :  { %v98_v31 = vrot.slane %v97_v28, 1  ;;  %v111_v32 = vld [vmem:[#allocation0 + $0x3f] ss:$-1 sm:$0xff]  ;;  %164 = vst [vmem:[#allocation1 + $0x38] sm:$0xff] %v163_v25  ;;  %v125_v34 = vld [vmem:[#allocation0 + $0x4f] ss:$-1 sm:$0xff] }
   0xc   :  { %v112_v33 = vrot.slane %v111_v32, 1  ;;  %v139_v35 = vld [vmem:[#allocation0 + $0x5f] ss:$-1 sm:$0xff]  ;;  %74 = vst.msk [vmem:[#allocation1] sm:$0xff] %vm73_vm0, %v70_v29  ;;  %88 = vst.msk [vmem:[#allocation1 + $0x8] sm:$0xff] %vm73_vm0, %v84_v30  ;;  %v126_v36 = vrot.slane %v125_v34, 1 }
   0xd   :  { %102 = vst.msk [vmem:[#allocation1 + $0x10] sm:$0xff] %vm73_vm0, %v98_v31  ;;  %v140_v37 = vrot.slane %v139_v35, 1  ;;  %v153_v38 = vld [vmem:[#allocation0 + $0x6f] ss:$-1 sm:$0xff]  ;;  %v167_v39 = vld [vmem:[#allocation0 + $0x7f] ss:$-1 sm:$0xff] }
   0xe   :  { %116 = vst.msk [vmem:[#allocation1 + $0x18] sm:$0xff] %vm73_vm0, %v112_v33  ;;  %v154_v40 = vrot.slane %v153_v38, 1  ;;  %v168_v41 = vrot.slane %v167_v39, 1  ;;  %130 = vst.msk [vmem:[#allocation1 + $0x20] sm:$0xff] %vm73_vm0, %v126_v36 }
   0xf   :  { %144 = vst.msk [vmem:[#allocation1 + $0x28] sm:$0xff] %vm73_vm0, %v140_v37 }
  0x10   :  { %158 = vst.msk [vmem:[#allocation1 + $0x30] sm:$0xff] %vm73_vm0, %v154_v40  ;;  %172 = vst.msk [vmem:[#allocation1 + $0x38] sm:$0xff] %vm73_vm0, %v168_v41 }
  0x13   :  { %v214_v42 = vld [vmem:[#allocation1] sm:$0xff]  ;;  %v216_v43 = vld [vmem:[#allocation1 + $0x8] sm:$0xff] }
  0x14   :  { %v218_v44 = vld [vmem:[#allocation1 + $0x10] sm:$0xff]  ;;  %215 = vst [vmem:[%s330_s1] sm:$0xff] %v214_v42  ;;  %217 = vst [vmem:[%s330_s1 + $0x8] sm:$0xff] %v216_v43 }
  0x15   :  { %219 = vst [vmem:[%s330_s1 + $0x10] sm:$0xff] %v218_v44  ;;  %v220_v45 = vld [vmem:[#allocation1 + $0x18] sm:$0xff]  ;;  %v222_v46 = vld [vmem:[#allocation1 + $0x20] sm:$0xff] }
  0x16   :  { %221 = vst [vmem:[%s330_s1 + $0x18] sm:$0xff] %v220_v45  ;;  %v224_v47 = vld [vmem:[#allocation1 + $0x28] sm:$0xff]  ;;  %223 = vst [vmem:[%s330_s1 + $0x20] sm:$0xff] %v222_v46 }
  0x17   :  { %225 = vst [vmem:[%s330_s1 + $0x28] sm:$0xff] %v224_v47  ;;  %v226_v48 = vld [vmem:[#allocation1 + $0x30] sm:$0xff]  ;;  %v228_v49 = vld [vmem:[#allocation1 + $0x38] sm:$0xff] }
  0x18   :  { %227 = vst [vmem:[%s330_s1 + $0x30] sm:$0xff] %v226_v48  ;;  %229 = vst [vmem:[%s330_s1 + $0x38] sm:$0xff] %v228_v49 }

// kernel: _lambda_.7
= control target key start
LH: loop header
LB: loop body
LE: loop exit
PB: predicated region body
PF: predicated region fallthrough
CT: control target
= control target key end

     0   :  { %s1131_s13 = smov 0   ;;  %s1133_s14 = smov 0   ;;  %s1224_s0 = inlined_call_operand.vmem [shape: f32[2,8,256], index: 0, kind: input, shape index: {}]   ;;  %s1225_s1 = inlined_call_operand.vmem [shape: f32[2,8,256], index: 1, kind: input, shape index: {}]   ;;  %s1226_s2 = inlined_call_operand.vmem [shape: bf16[2,4,256], index: 2, kind: input, shape index: {}]   ;;  %s1227_s3 = inlined_call_operand.vmem [shape: f32[2,4,256], index: 3, kind: input, shape index: {}]   ;;  %s1228_s4 = inlined_call_operand.vmem [shape: f32[2,4,128], index: 4, kind: input, shape index: {}]   ;;  %s1229_s5 = inlined_call_operand.vmem [shape: f32[8,8], index: 5, kind: input, shape index: {}]   ;;  %s1230_s6 = inlined_call_operand.vmem [shape: f32[8,8], index: 6, kind: input, shape index: {}]   ;;  %s1231_s7 = inlined_call_operand.vmem [shape: f32[8,8], index: 7, kind: input, shape index: {}]   ;;  %s1232_s8 = inlined_call_operand.vmem [shape: f32[8,4], index: 8, kind: input, shape index: {}]   ;;  %s1233_s9 = inlined_call_operand.vmem [shape: f32[2,8,256], index: 9, kind: output, shape index: {0}]   ;;  %s1234_s10 = inlined_call_operand.vmem [shape: f32[2,8,256], index: 10, kind: output, shape index: {1}]  }
   0x1   :  { %1235 = sst [smem:[#allocation3_spill]] %s1224_s0  ;;  %s1135_s15 = smov 0  }
   0x2   :  { %s1137_s16 = smov 0   ;;  %s1139_s17 = smov 0  }
   0x3 LB: > { %s30_s18 = sadd.s32 1, %s1064_s15  ;;  %s33_s19 = sadd.s32 1, %s1068_s16  ;;  %s1072_s17 = sphi %s1139_s17, %s21_s17   ;;  %s1068_s16 = sphi %s1137_s16, %s1242_s16   ;;  %s1064_s15 = sphi %s1135_s15, %s1241_s15   ;;  %s1060_s14 = sphi %s1133_s14, %s1240_s14   ;;  %s1056_s13 = sphi %s1131_s13, %s1239_s13  }
   0x4   : > { %p31_p0 = scmp.ge.s32.totalorder %s30_s18, 2  ;;  %p932_p1 = scmp.ge.s32.totalorder %s1072_s17, 1 }
   0x5   : > { %p390_p2 = scmp.lt.s32.totalorder %s1072_s17, 5 }
   0x6   : > { %s1244_s18 = smov (%p31_p0, %s30_s18), 0  ;;  %s1246_s19 = smov (!%p31_p0, %s33_s19), %s1068_s16 }
   0x7   : > { %p391_p3 = pnand %p932_p1, %p390_p2  ;;  %p35_p4 = scmp.ge.s32.totalorder %s1246_s19, 2 }
   0x8   : > { %p470_p5 = scmp.lt.s32.totalorder (!%p391_p3), %s1060_s14, 1  ;;  %p472_p6 = scmp.lt.s32.totalorder (!%p391_p3), %s1056_s13, 1  ;;  %v1074_v0 = vmov (!%p391_p3), 0.0   ;;  %vm1075_vm0 = vmmov (!%p391_p3), 0   ;;  %vm541_vm1 = vcmask (!%p391_p3), 1043456   ;;  %v535_v3 = vld [vmem:[%s1230_s6] sm:$0xff] (!%p391_p3) }
   0x9   : > { %s1248_s19 = smov (%p35_p4, %s1246_s19), 0  ;;  %394 = sbr.rel (%p391_p3) target bundleno = 263 (0x107), region = 56 }
   0xa   : > { %1236 = sst [smem:[#allocation2_spill]] %s1248_s19  ;;  %960 = vmatprep.subr.bf16.mxu0 (!%p391_p3), %v1074_v0  ;;  %962 = vmatprep.mubr.msk.bf16.mxu0 (!%p391_p3), %vm1075_vm0, %v1074_v0  ;;  %s1237_s0 = sld [smem:[#allocation3_spill]] (!%p391_p3)  ;;  %v536_v10 = vpack.c.bf16 (!%p391_p3), %v535_v3, %v535_v3  ;;  %vm537_vm2 = vcmask (!%p391_p3), 64512   ;;  %vm640_vm3 = vcmask (!%p391_p3), 1041408   ;;  %v633_v15 = vld [vmem:[%s1232_s8] sm:$0xff] (!%p391_p3)  ;;  %vm636_vm4 = vcmask (!%p391_p3), 31744  }
   0xb   : > { %972 = vmatprep.subr.bf16.mxu1 (!%p391_p3), %v1074_v0  ;;  %974 = vmatprep.mubr.msk.bf16.mxu1 (!%p391_p3), %vm1075_vm0, %v1074_v0  ;;  %v634_v18 = vpack.c.bf16 (!%p391_p3), %v633_v15, %v633_v15  ;;  %v533_v19 = vld [vmem:[%s1229_s5] sm:$0xff] (!%p391_p3) }
   0xc   : > { %v534_v20 = vpack.c.bf16 (!%p391_p3), %v533_v19, %v533_v19  ;;  %v631_v21 = vld [vmem:[%s1231_s7] sm:$0xff] (!%p391_p3) }
   0xd   : > { %v632_v22 = vpack.c.bf16 (!%p391_p3), %v631_v21, %v631_v21 }
  0x10   : > { %s1250_s14 = smov (!%p470_p5, %s1060_s14), 1  ;;  %s1252_s13 = smov (!%p472_p6, %s1056_s13), 1 }
  0x11   : > { %s933_s20 = sshll.u32 %s1250_s14, 1  ;;  %s941_s21 = sshll.u32 %s1250_s14, 2 }
  0x12   : > { %s475_s22 = sadd.s32 %s933_s20, %s1252_s13  ;;  %s505_s25 = scalar_lea.vmem %s1228_s4, %s941_s21 }
  0x13   : > { %s1166_s26 = sshll.u32 %s475_s22, 3  ;;  %s938_s27 = sshll.u32 %s475_s22, 1  ;;  %v531_v11 = vld [vmem:[%s505_s25] sm:$0xf] }
  0x14   : > { %s477_s30 = scalar_lea.vmem %s1237_s0, %s1166_s26  ;;  %s485_s19 = scalar_lea.vmem %s1225_s1, %s1166_s26 }
  0x15   : > { %v523_v1 = vld [vmem:[%s477_s30] sm:$0xff]  ;;  %s493_s23 = scalar_lea.vmem %s1226_s2, %s938_s27  ;;  %s940_s24 = sshll.u32 %s475_s22, 2 }
  0x16   : > { %v525_v2 = vld [vmem:[%s485_s19] sm:$0xff]  ;;  %v524_v4 = vpack.c.bf16 %v523_v1, %v523_v1  ;;  %s501_s0 = scalar_lea.vmem %s1227_s3, %s940_s24  ;;  %s513_s13 = scalar_lea.vmem %s1233_s9, %s1166_s26 }
  0x17   : > { %v526_v5 = vpack.c.bf16 %v525_v2, %v525_v2  ;;  %v527_v6 = vld [vmem:[%s493_s23] sm:$0x3]  ;;  %s521_s21 = scalar_lea.vmem %s1234_s10, %s1166_s26 }
  0x18   : > { %v528_v7 = vunpack.c.l.bf16 %v527_v6  ;;  %v529_v8 = vld [vmem:[%s501_s0] sm:$0xf]  ;;  %v589_v13 = vsel %vm541_vm1, %v524_v4, 0 }
  0x19   : > { %v543_v9 = vsel %vm541_vm1, %v526_v5, 0 }
  0x1a   : > { %961 = vmatpush3.bf16.msra.mxu0 %v543_v9  ;;  %v530_v12 = vadd.f32 %v529_v8, %v528_v7 }
  0x1b   : > { %966 = vmatprep.subr.bf16.mxu0 %v1074_v0 }
  0x1c   : > { %v532_v14 = vadd.f32 %v531_v11, %v530_v12 }
  0x1d   : > { %963 = vmatmul.mubr.msk.bf16.vlgmr.msra.gmra.mrb[0].mxu0 %vm537_vm2, %v536_v10 }
  0x1e   : > { %v635_v16 = vpack.c.bf16 %v532_v14, %v532_v14  ;;  %967 = vmatpush3.bf16.msra.mxu0 %v589_v13  ;;  %968 = vmatprep.mubr.msk.bf16.mxu0 %vm1075_vm0, %v1074_v0 }
  0x20   : > { %v642_v17 = vsel %vm640_vm3, %v635_v16, 0 }
  0x21   : > { %973 = vmatpush3.bf16.msra.mxu1 %v642_v17 }
  0x22   : > { %978 = vmatprep.subr.bf16.mxu1 %v1074_v0 }
  0x24   : > { %975 = vmatmul.mubr.msk.bf16.vlgmr.msra.gmra.mrb[0].mxu1 %vm636_vm4, %v634_v18 }
  0x25   : > { %979 = vmatpush3.bf16.msra.mxu1 %v589_v13  ;;  %980 = vmatprep.mubr.msk.bf16.mxu1 %vm1075_vm0, %v1074_v0 }
  0x29   : > { %969 = vmatmul.mubr.msk.bf16.vlgmr.msra.gmra.mrb[0].mxu0 %vm537_vm2, %v534_v20 }
  0x30   : > { %981 = vmatmul.mubr.msk.bf16.vlgmr.msra.gmra.mrb[0].mxu1 %vm537_vm2, %v632_v22 }
  0xfc   : > { %v625_v23 = vpop.f32.mrb[0].mxu0 }
  0xfd   : > { %727 = vst [vmem:[%s513_s13] sm:$0xff] %v625_v23  ;;  %v970_v24 = vpop.f32.mrb[1].mxu0 }
  0xfe   : > { %v628_v25 = vpop.f32.mrb[2].mxu0 }
  0xff   : > { %v971_v26 = vpop.f32.mrb[3].mxu0 }
 0x103   : > { %v721_v27 = vpop.f32.mrb[0].mxu1 }
 0x104   : > { %728 = vst [vmem:[%s521_s21] sm:$0xff] %v721_v27  ;;  %v982_v28 = vpop.f32.mrb[1].mxu1 }
 0x105   : > { %v724_v29 = vpop.f32.mrb[2].mxu1 }
 0x106   : > { %v983_v30 = vpop.f32.mrb[3].mxu1 }
 0x107 PF: > { %s21_s17 = sadd.s32 1, %s1072_s17   ;;  %s1238_s23 = sld [smem:[#allocation2_spill]] }
 0x108   : > { %p18_p7 = scmp.ge.s32.totalorder %s21_s17, 6   ;;  %s1239_s13 = smov %s1064_s15 }
 0x109   : > { %s1240_s14 = smov %s1068_s16  ;;  %s1241_s15 = smov %s1244_s18 }
 0x10a   :  { %20 = sbr.rel (!%p18_p7) target bundleno = 3 (0x3), region = 110 }
 0x10d   : > { %s1242_s16 = smov %s1238_s23 }

</bundles_post_ra>
